<compile_context>
chip_gen: v7x
topology: tpu7x:2x2x1
jax: 0.10.0
libtpu: 0.0.40
codegen_flags: <defaults>
</compile_context>

<pallas_src>
import math

import jax
import jax.numpy as jnp
from jax.experimental import pallas as pl
from jax.experimental.pallas import tpu as pltpu

VTH = 0.5            # firing threshold (tdBN alpha*Vth scale, alpha=1)
TAU = 0.25           # membrane leak
MLF_LEVELS = 2       # multi-level firing levels
EPS = 1e-5           # BN epsilon
VMEM_LIMIT = 48 * 1024 * 1024     # explicit scoped-VMEM limit (<= v7x physical 64 MiB)
CONV_VMEM_BUDGET = 20 << 20       # per-grid-step live-buffer budget for the conv kernel
EPI_VMEM_BUDGET = 24 << 20        # per-grid-step streamed-tile budget for the epilogues


# ------------------------------------------------------------------ tiling helpers
def _row_tile(m, t_steps, c, n_streams, budget=EPI_VMEM_BUDGET):
    """Largest divisor of m (multiple of 16 preferred for bf16 stores, else 8) whose
    double-buffered streamed tiles fit the budget."""
    cap = max(16, budget // (n_streams * 2 * t_steps * c * 2))   # bf16, 2x pipeline buffers
    best8 = None
    for d in range(min(cap, m), 0, -1):
        if m % d == 0:
            if d % 16 == 0:
                return d
            if best8 is None and d % 8 == 0:
                best8 = d
    return best8 if best8 is not None else m


def _chunk_rows(tile, n_states):
    """Membrane-state sub-chunk rows: keep each (chunk, C) f32 state inside the vreg file."""
    cap = 128 if n_states == 1 else 64
    for d in range(min(cap, tile), 7, -1):
        if tile % d == 0 and d % 8 == 0:
            return d
    return tile


def _pick_nb(n, ho, wo, cin, cout, ntap, src_elems_per_img, budget=CONV_VMEM_BUDGET):
    """Images per conv grid step; counts ALL live VMEM buffers per step (v7x has 64 MiB)."""
    hw = ho * wo
    per_img = (
        2 * 2 * src_elems_per_img      # bf16 sources, double-buffered by the pipeline
        + 4 * src_elems_per_img        # transient f32 window upcasts (conservative upper bound)
        + 2 * ntap * hw * cin          # bf16 im2col scratch (single-buffered)
        + 4 * hw * cout                # f32 MXU accumulator
        + 2 * 2 * hw * cout            # bf16 pre-BN output, double-buffered
    )
    divs = [d for d in range(1, n + 1)
            if n % d == 0 and ((d * hw) % 8 == 0 or d == n)]
    fit = [d for d in divs if d * per_img <= budget]
    if not fit:
        return min(divs)
    multi = [d for d in fit if n // d >= 2]     # >=2 steps keeps megacore / pipeline overlap
    return max(multi) if multi else max(fit)


# ------------------------------------------------------ conv (+ tdBN statistics) kernel
def _make_conv_kernel(plan, ho, wo, rows, cin, nsrc):
    ntap = len(plan)

    def kernel(*refs):
        src = refs[:nsrc]
        w_ref = refs[nsrc]
        y_ref, s_ref, q_ref = refs[nsrc + 1:nsrc + 4]

        def window(si, r0, c0):
            # The f32 round-trip keeps the (nb,ho,wo,cin)->(rows,cin) collapse on the
            # well-supported 8-sublane layout; the MXU operand itself stays bf16.
            w32 = src[si][:, r0:r0 + ho, c0:c0 + wo, :].astype(jnp.float32)
            return w32.reshape(rows, cin).astype(jnp.bfloat16)

        if ntap == 1:                                    # 1x1 shortcut conv
            si, r0, c0, _ = plan[0]
            a = window(si, r0, c0)
        else:                                            # assemble (rows, ntap*cin) im2col tile
            a_scr = refs[nsrc + 4]
            for (si, r0, c0, wi) in plan:
                a_scr[:, wi * cin:(wi + 1) * cin] = window(si, r0, c0)
            a = a_scr[...]

        # Single big-K MXU dot with f32 accumulation.
        acc = jnp.dot(a, w_ref[...], preferred_element_type=jnp.float32)
        y_ref[...] = acc.astype(y_ref.dtype)                       # bf16 pre-BN activation
        s_ref[0] = jnp.sum(acc, axis=0, keepdims=True)             # per-step partial stats (f32)
        q_ref[0] = jnp.sum(acc * acc, axis=0, keepdims=True)

    return kernel


def conv2d_bn_stats(x, w, stride):
    """NHWC conv (3x3 pad=1, or 1x1) + per-channel batch statistics for tdBN.

    Returns y (N*Ho*Wo, cout) bf16 pre-BN, mean (1,cout), var (1,cout), (N, Ho, Wo, cout)."""
    n, h, wd, cin = x.shape
    kh, kw, _, cout = w.shape
    x = x.astype(jnp.bfloat16)

    if kh == 1:                                          # 1x1 shortcut conv
        src0 = x if stride == 1 else x[:, ::stride, ::stride, :]
        ho, wo = src0.shape[1], src0.shape[2]
        sources, plan = [src0], [(0, 0, 0, 0)]
    else:                                                # 3x3, pad = 1
        xp = jnp.pad(x, ((0, 0), (1, 1), (1, 1), (0, 0)))
        if stride == 1:
            ho, wo = h, wd
            sources = [xp]
            plan = [(0, dh, dw, dh * 3 + dw) for dh in range(3) for dw in range(3)]
        else:                                            # stride 2 via polyphase split (no
            ho, wo = h // 2, wd // 2                     # strided accesses inside the kernel)
            sources = [xp[:, p::2, q::2, :] for p in (0, 1) for q in (0, 1)]
            plan = [(2 * (dh % 2) + (dw % 2), dh // 2, dw // 2, dh * 3 + dw)
                    for dh in range(3) for dw in range(3)]

    ntap = kh * kw
    wt = w.reshape(ntap * cin, cout).astype(jnp.bfloat16)   # K order matches the plan tap order
    src_elems = sum(int(s.shape[1]) * int(s.shape[2]) * int(s.shape[3]) for s in sources)
    nb = _pick_nb(n, ho, wo, cin, cout, ntap, src_elems)
    gsteps = n // nb
    rows = nb * ho * wo
    rows_total = n * ho * wo

    in_specs = [pl.BlockSpec((nb,) + s.shape[1:], lambda i: (i, 0, 0, 0)) for s in sources]
    in_specs.append(pl.BlockSpec(wt.shape, lambda i: (0, 0)))
    scratch = [pltpu.VMEM((rows, ntap * cin), jnp.bfloat16)] if ntap > 1 else []

    y, s, q = pl.pallas_call(
        _make_conv_kernel(plan, ho, wo, rows, cin, len(sources)),
        out_shape=(jax.ShapeDtypeStruct((rows_total, cout), jnp.bfloat16),
                   jax.ShapeDtypeStruct((gsteps, 1, cout), jnp.float32),
                   jax.ShapeDtypeStruct((gsteps, 1, cout), jnp.float32)),
        grid=(gsteps,),
        in_specs=in_specs,
        out_specs=(pl.BlockSpec((rows, cout), lambda i: (i, 0)),
                   pl.BlockSpec((1, 1, cout), lambda i: (i, 0, 0)),
                   pl.BlockSpec((1, 1, cout), lambda i: (i, 0, 0))),
        scratch_shapes=scratch,
        compiler_params=pltpu.CompilerParams(
            dimension_semantics=("parallel",),   # no resident accumulator -> megacore-friendly
            vmem_limit_bytes=VMEM_LIMIT),
    )(*sources, wt)

    # Hierarchical reduction (per-block partials -> XLA sum) keeps E[x^2]-E[x]^2 cancellation
    # bounded by block size; var is clamped non-negative in bn_scale_bias.
    mean = jnp.sum(s, axis=0) / rows_total               # (1, cout)
    var = jnp.sum(q, axis=0) / rows_total - mean * mean
    return y, mean, var, (n, ho, wo, cout)


def bn_scale_bias(mean, var, gamma, beta, alpha=1.0):
    """Fold tdBatchNorm (alpha*Vth scaled, batch statistics) into per-channel scale/bias."""
    scale = (alpha * VTH) * gamma / jnp.sqrt(jnp.maximum(var, 0.0) + EPS)
    bias = beta - mean * scale
    return scale.astype(jnp.float32), bias.astype(jnp.float32)


# ------------------------------------------------------ fused tdBN-apply + MLF-spike epilogues
def _lif_step(u, v):
    u = u * TAU + v
    s = jnp.zeros_like(u)
    for lvl in range(MLF_LEVELS):
        s = s + (u >= (lvl + 1) * VTH).astype(jnp.float32)
    return u - s * VTH, s


def _make_bn_spike_kernel(t_steps, chunk):
    # out = MLF(bn1(conv1(x)))
    def kernel(y_ref, g_ref, b_ref, o_ref):
        scale, bias = g_ref[...], b_ref[...]
        c = y_ref.shape[2]

        @pl.loop(0, y_ref.shape[1] // chunk)
        def _(ci):
            r = pl.multiple_of(ci * chunk, chunk)
            u = jnp.zeros((chunk, c), jnp.float32)          # membrane stays in vregs per chunk
            for t in range(t_steps):
                v = y_ref[t, pl.ds(r, chunk), :].astype(jnp.float32) * scale + bias
                u, s = _lif_step(u, v)
                o_ref[t, pl.ds(r, chunk), :] = s.astype(o_ref.dtype)
    return kernel


def _make_bn_spike_add_ds_kernel(t_steps, chunk):
    # out = MLF(bn2(conv2)) + MLF(bn_sc(conv1x1(x)))   (modified=True, downsample shortcut)
    def kernel(y_ref, g2_ref, b2_ref, ys_ref, gs_ref, bs_ref, o_ref):
        g2, b2 = g2_ref[...], b2_ref[...]
        gs, bs = gs_ref[...], bs_ref[...]
        c = y_ref.shape[2]

        @pl.loop(0, y_ref.shape[1] // chunk)
        def _(ci):
            r = pl.multiple_of(ci * chunk, chunk)
            um = jnp.zeros((chunk, c), jnp.float32)
            us = jnp.zeros((chunk, c), jnp.float32)
            for t in range(t_steps):
                um, sm = _lif_step(um, y_ref[t, pl.ds(r, chunk), :].astype(jnp.float32) * g2 + b2)
                us, ss = _lif_step(us, ys_ref[t, pl.ds(r, chunk), :].astype(jnp.float32) * gs + bs)
                o_ref[t, pl.ds(r, chunk), :] = (sm + ss).astype(o_ref.dtype)
    return kernel


def _make_bn_spike_add_id_kernel(t_steps, chunk):
    # out = MLF(bn2(conv2)) + x                        (modified=True, identity shortcut)
    def kernel(y_ref, g2_ref, b2_ref, x_ref, o_ref):
        g2, b2 = g2_ref[...], b2_ref[...]
        c = y_ref.shape[2]

        @pl.loop(0, y_ref.shape[1] // chunk)
        def _(ci):
            r = pl.multiple_of(ci * chunk, chunk)
            um = jnp.zeros((chunk, c), jnp.float32)
            for t in range(t_steps):
                um, sm = _lif_step(um, y_ref[t, pl.ds(r, chunk), :].astype(jnp.float32) * g2 + b2)
                res = x_ref[t, pl.ds(r, chunk), :].astype(jnp.float32)
                o_ref[t, pl.ds(r, chunk), :] = (sm + res).astype(o_ref.dtype)
    return kernel


def _epilogue_call(factory, args, kinds, t_steps, n_states, out_dtype=jnp.bfloat16):
    """Run a fused epilogue kernel over (T, M, C) tensors tiled along M.

    kinds[i]: 't' -> (T*M, C) activation (time-major rows), 'c' -> (1, C) per-channel vector."""
    first = args[kinds.index('t')]
    tm_rows, c = first.shape
    m = tm_rows // t_steps
    n_streams = kinds.count('t') + 1                 # streamed inputs + the output
    tile = _row_tile(m, t_steps, c, n_streams)
    chunk = _chunk_rows(tile, n_states)

    ins, specs = [], []
    for a, k in zip(args, kinds):
        if k == 't':
            ins.append(a.reshape(t_steps, m, c))
            specs.append(pl.BlockSpec((t_steps, tile, c), lambda i: (0, i, 0)))
        else:
            ins.append(a)
            specs.append(pl.BlockSpec((1, c), lambda i: (0, 0)))

    out = pl.pallas_call(
        factory(t_steps, chunk),
        out_shape=jax.ShapeDtypeStruct((t_steps, m, c), out_dtype),
        grid=(m // tile,),
        in_specs=specs,
        out_specs=pl.BlockSpec((t_steps, tile, c), lambda i: (0, i, 0)),
        compiler_params=pltpu.CompilerParams(
            dimension_semantics=("parallel",), vmem_limit_bytes=VMEM_LIMIT),
    )(*ins)
    return out.reshape(tm_rows, c)


# ------------------------------------------------------------------ BasicBlock forward
def basic_block_forward(p, x_nhwc, timestep):
    """BasicBlock(in_planes, planes, stride, timestep, modified=True) forward.

    x_nhwc: (T*B, H, W, in_planes), time-major along batch.  Returns (T*B, Ho, Wo, planes)."""
    n, h, wd, cin = x_nhwc.shape
    stride = p['stride']
    cout = p['conv1_w'].shape[-1]
    downsample = (stride != 1) or (cin != cout)
    x_bf = x_nhwc.astype(jnp.bfloat16)

    # conv1 -> tdBN1 -> MLF spike
    y1, m1, v1, (_, ho, wo, _) = conv2d_bn_stats(x_bf, p['conv1_w'], stride)
    g1, b1 = bn_scale_bias(m1, v1, p['bn1_g'], p['bn1_b'])
    s1 = _epilogue_call(_make_bn_spike_kernel, [y1, g1, b1], ['t', 'c', 'c'],
                        timestep, n_states=1)                        # bf16 spikes

    # conv2 -> tdBN2; BN-apply + spike + residual add happen in one fused epilogue
    y2, m2, v2, _ = conv2d_bn_stats(s1.reshape(n, ho, wo, cout), p['conv2_w'], 1)
    g2, b2 = bn_scale_bias(m2, v2, p['bn2_g'], p['bn2_b'])

    if downsample:
        ys, ms, vs, _ = conv2d_bn_stats(x_bf, p['sc_w'], stride)     # 1x1 conv shortcut
        gs, bs = bn_scale_bias(ms, vs, p['sc_bn_g'], p['sc_bn_b'])
        out = _epilogue_call(_make_bn_spike_add_ds_kernel,
                             [y2, g2, b2, ys, gs, bs],
                             ['t', 'c', 'c', 't', 'c', 'c'], timestep, n_states=2)
    else:
        out = _epilogue_call(_make_bn_spike_add_id_kernel,
                             [y2, g2, b2, x_bf.reshape(n * h * wd, cin)],
                             ['t', 'c', 'c', 't'], timestep, n_states=1)
    return out.reshape(n, ho, wo, cout)


# ------------------------------------------------------------------ parameter init
def _kaiming(key, shape, fan_in):
    return jax.random.normal(key, shape, jnp.float32) * math.sqrt(2.0 / fan_in)


def init_block_params(key, in_planes, planes, stride):
    k = jax.random.split(key, 3)
    p = {
        'stride': stride,
        'conv1_w': _kaiming(k[0], (3, 3, in_planes, planes), 9 * in_planes),
        'bn1_g': jnp.ones((1, planes), jnp.float32),
        'bn1_b': jnp.zeros((1, planes), jnp.float32),
        'conv2_w': _kaiming(k[1], (3, 3, planes, planes), 9 * planes),
        'bn2_g': jnp.ones((1, planes), jnp.float32),
        'bn2_b': jnp.zeros((1, planes), jnp.float32),
    }
    if stride != 1 or in_planes != planes:
        p['sc_w'] = _kaiming(k[2], (1, 1, in_planes, planes), in_planes)
        p['sc_bn_g'] = jnp.ones((1, planes), jnp.float32)
        p['sc_bn_b'] = jnp.zeros((1, planes), jnp.float32)
    return p


if __name__ == "__main__":
    key = jax.random.PRNGKey(0)
    kp1, kp2, kx = jax.random.split(key, 3)

    timestep, batch = 2, 2
    height = width = 16
    in_planes, planes = 64, 128

    blk_down = init_block_params(kp1, in_planes, planes, stride=2)   # conv shortcut + MLF
    blk_id = init_block_params(kp2, planes, planes, stride=1)        # identity shortcut

    x = jax.random.normal(kx, (batch, in_planes, height, width), jnp.float32)  # NCHW, torch-like
    x_t = jnp.concatenate([x] * timestep, axis=0)                    # (T*B, C, H, W) time-major
    x_nhwc = jnp.transpose(x_t, (0, 2, 3, 1))                        # NCHW -> NHWC

    out1 = basic_block_forward(blk_down, x_nhwc, timestep)           # (T*B, 8, 8, 128)
    out2 = basic_block_forward(blk_id, out1, timestep)               # (T*B, 8, 8, 128)
    out_nchw = jnp.transpose(out2, (0, 3, 1, 2))                     # back to torch layout

    jax.block_until_ready(out_nchw)
    assert out1.shape == (timestep * batch, height // 2, width // 2, planes)
    assert out_nchw.shape == (timestep * batch, planes, height // 2, width // 2)
    assert bool(jnp.all(jnp.isfinite(out_nchw.astype(jnp.float32))))
    print("KERNEL_OK")
</pallas_src>

<mosaic_0001>
module attributes {stable_mosaic.version = 11 : i64} {
  func.func @kernel(%arg0: i32, %arg1: memref<2x9x9x64xbf16, #tpu.memory_space<vmem>>, %arg2: memref<2x9x9x64xbf16, #tpu.memory_space<vmem>>, %arg3: memref<2x9x9x64xbf16, #tpu.memory_space<vmem>>, %arg4: memref<2x9x9x64xbf16, #tpu.memory_space<vmem>>, %arg5: memref<576x128xbf16, #tpu.memory_space<vmem>>, %arg6: memref<128x128xbf16, #tpu.memory_space<vmem>>, %arg7: memref<1x1x128xf32, #tpu.memory_space<vmem>>, %arg8: memref<1x1x128xf32, #tpu.memory_space<vmem>>, %arg9: memref<128x576xbf16, #tpu.memory_space<vmem>>) attributes {dimension_semantics = [#tpu.dimension_semantics<parallel>], iteration_bounds = array<i64: 2>, scalar_prefetch = 0 : i64, scratch_operands = 1 : i64, tpu.core_type = #tpu.core_type<tc>, window_params = [{transform_indices = @transform_0, window_bounds = array<i64: 2, 9, 9, 64>}, {transform_indices = @transform_1, window_bounds = array<i64: 2, 9, 9, 64>}, {transform_indices = @transform_2, window_bounds = array<i64: 2, 9, 9, 64>}, {transform_indices = @transform_3, window_bounds = array<i64: 2, 9, 9, 64>}, {pipeline_mode = #tpu.pipeline_mode<synchronous>, transform_indices = @transform_4, window_bounds = array<i64: 576, 128>}, {transform_indices = @transform_5, window_bounds = array<i64: 128, 128>}, {transform_indices = @transform_6, window_bounds = array<i64: 1, 1, 128>}, {transform_indices = @transform_7, window_bounds = array<i64: 1, 1, 128>}]} {
    %c0 = arith.constant 0 : index
    %c0_0 = arith.constant 0 : index
    %c0_1 = arith.constant 0 : index
    %c0_2 = arith.constant 0 : index
    %0 = vector.load %arg1[%c0, %c0_0, %c0_1, %c0_2] : memref<2x9x9x64xbf16, #tpu.memory_space<vmem>>, vector<2x8x8x64xbf16>
    %1 = arith.extf %0 : vector<2x8x8x64xbf16> to vector<2x8x8x64xf32>
    %2 = vector.shape_cast %1 : vector<2x8x8x64xf32> to vector<128x64xf32>
    %3 = arith.truncf %2 : vector<128x64xf32> to vector<128x64xbf16>
    %c0_3 = arith.constant 0 : index
    %c0_4 = arith.constant 0 : index
    %4 = vector.load %arg9[%c0_3, %c0_4] : memref<128x576xbf16, #tpu.memory_space<vmem>>, vector<128x64xbf16>
    tpu.vector_store %arg9[%c0_3, %c0_4], %3 {strides = array<i32>} : memref<128x576xbf16, #tpu.memory_space<vmem>>, vector<128x64xbf16>,
    %c0_5 = arith.constant 0 : index
    %c0_6 = arith.constant 0 : index
    %c0_7 = arith.constant 0 : index
    %c0_8 = arith.constant 0 : index
    %5 = vector.load %arg2[%c0_5, %c0_6, %c0_7, %c0_8] : memref<2x9x9x64xbf16, #tpu.memory_space<vmem>>, vector<2x8x8x64xbf16>
    %6 = arith.extf %5 : vector<2x8x8x64xbf16> to vector<2x8x8x64xf32>
    %7 = vector.shape_cast %6 : vector<2x8x8x64xf32> to vector<128x64xf32>
    %8 = arith.truncf %7 : vector<128x64xf32> to vector<128x64xbf16>
    %c0_9 = arith.constant 0 : index
    %c64 = arith.constant 64 : index
    %9 = vector.load %arg9[%c0_9, %c64] : memref<128x576xbf16, #tpu.memory_space<vmem>>, vector<128x64xbf16>
    tpu.vector_store %arg9[%c0_9, %c64], %8 {strides = array<i32>} : memref<128x576xbf16, #tpu.memory_space<vmem>>, vector<128x64xbf16>,
    %c0_10 = arith.constant 0 : index
    %c0_11 = arith.constant 0 : index
    %c1 = arith.constant 1 : index
    %c0_12 = arith.constant 0 : index
    %10 = vector.load %arg1[%c0_10, %c0_11, %c1, %c0_12] : memref<2x9x9x64xbf16, #tpu.memory_space<vmem>>, vector<2x8x8x64xbf16>
    %11 = arith.extf %10 : vector<2x8x8x64xbf16> to vector<2x8x8x64xf32>
    %12 = vector.shape_cast %11 : vector<2x8x8x64xf32> to vector<128x64xf32>
    %13 = arith.truncf %12 : vector<128x64xf32> to vector<128x64xbf16>
    %c0_13 = arith.constant 0 : index
    %c128 = arith.constant 128 : index
    %14 = vector.load %arg9[%c0_13, %c128] : memref<128x576xbf16, #tpu.memory_space<vmem>>, vector<128x64xbf16>
    tpu.vector_store %arg9[%c0_13, %c128], %13 {strides = array<i32>} : memref<128x576xbf16, #tpu.memory_space<vmem>>, vector<128x64xbf16>,
    %c0_14 = arith.constant 0 : index
    %c0_15 = arith.constant 0 : index
    %c0_16 = arith.constant 0 : index
    %c0_17 = arith.constant 0 : index
    %15 = vector.load %arg3[%c0_14, %c0_15, %c0_16, %c0_17] : memref<2x9x9x64xbf16, #tpu.memory_space<vmem>>, vector<2x8x8x64xbf16>
    %16 = arith.extf %15 : vector<2x8x8x64xbf16> to vector<2x8x8x64xf32>
    %17 = vector.shape_cast %16 : vector<2x8x8x64xf32> to vector<128x64xf32>
    %18 = arith.truncf %17 : vector<128x64xf32> to vector<128x64xbf16>
    %c0_18 = arith.constant 0 : index
    %c192 = arith.constant 192 : index
    %19 = vector.load %arg9[%c0_18, %c192] : memref<128x576xbf16, #tpu.memory_space<vmem>>, vector<128x64xbf16>
    tpu.vector_store %arg9[%c0_18, %c192], %18 {strides = array<i32>} : memref<128x576xbf16, #tpu.memory_space<vmem>>, vector<128x64xbf16>,
    %c0_19 = arith.constant 0 : index
    %c0_20 = arith.constant 0 : index
    %c0_21 = arith.constant 0 : index
    %c0_22 = arith.constant 0 : index
    %20 = vector.load %arg4[%c0_19, %c0_20, %c0_21, %c0_22] : memref<2x9x9x64xbf16, #tpu.memory_space<vmem>>, vector<2x8x8x64xbf16>
    %21 = arith.extf %20 : vector<2x8x8x64xbf16> to vector<2x8x8x64xf32>
    %22 = vector.shape_cast %21 : vector<2x8x8x64xf32> to vector<128x64xf32>
    %23 = arith.truncf %22 : vector<128x64xf32> to vector<128x64xbf16>
    %c0_23 = arith.constant 0 : index
    %c256 = arith.constant 256 : index
    %24 = vector.load %arg9[%c0_23, %c256] : memref<128x576xbf16, #tpu.memory_space<vmem>>, vector<128x64xbf16>
    tpu.vector_store %arg9[%c0_23, %c256], %23 {strides = array<i32>} : memref<128x576xbf16, #tpu.memory_space<vmem>>, vector<128x64xbf16>,
    %c0_24 = arith.constant 0 : index
    %c0_25 = arith.constant 0 : index
    %c1_26 = arith.constant 1 : index
    %c0_27 = arith.constant 0 : index
    %25 = vector.load %arg3[%c0_24, %c0_25, %c1_26, %c0_27] : memref<2x9x9x64xbf16, #tpu.memory_space<vmem>>, vector<2x8x8x64xbf16>
    %26 = arith.extf %25 : vector<2x8x8x64xbf16> to vector<2x8x8x64xf32>
    %27 = vector.shape_cast %26 : vector<2x8x8x64xf32> to vector<128x64xf32>
    %28 = arith.truncf %27 : vector<128x64xf32> to vector<128x64xbf16>
    %c0_28 = arith.constant 0 : index
    %c320 = arith.constant 320 : index
    %29 = vector.load %arg9[%c0_28, %c320] : memref<128x576xbf16, #tpu.memory_space<vmem>>, vector<128x64xbf16>
    tpu.vector_store %arg9[%c0_28, %c320], %28 {strides = array<i32>} : memref<128x576xbf16, #tpu.memory_space<vmem>>, vector<128x64xbf16>,
    %c0_29 = arith.constant 0 : index
    %c1_30 = arith.constant 1 : index
    %c0_31 = arith.constant 0 : index
    %c0_32 = arith.constant 0 : index
    %30 = vector.load %arg1[%c0_29, %c1_30, %c0_31, %c0_32] : memref<2x9x9x64xbf16, #tpu.memory_space<vmem>>, vector<2x8x8x64xbf16>
    %31 = arith.extf %30 : vector<2x8x8x64xbf16> to vector<2x8x8x64xf32>
    %32 = vector.shape_cast %31 : vector<2x8x8x64xf32> to vector<128x64xf32>
    %33 = arith.truncf %32 : vector<128x64xf32> to vector<128x64xbf16>
    %c0_33 = arith.constant 0 : index
    %c384 = arith.constant 384 : index
    %34 = vector.load %arg9[%c0_33, %c384] : memref<128x576xbf16, #tpu.memory_space<vmem>>, vector<128x64xbf16>
    tpu.vector_store %arg9[%c0_33, %c384], %33 {strides = array<i32>} : memref<128x576xbf16, #tpu.memory_space<vmem>>, vector<128x64xbf16>,
    %c0_34 = arith.constant 0 : index
    %c1_35 = arith.constant 1 : index
    %c0_36 = arith.constant 0 : index
    %c0_37 = arith.constant 0 : index
    %35 = vector.load %arg2[%c0_34, %c1_35, %c0_36, %c0_37] : memref<2x9x9x64xbf16, #tpu.memory_space<vmem>>, vector<2x8x8x64xbf16>
    %36 = arith.extf %35 : vector<2x8x8x64xbf16> to vector<2x8x8x64xf32>
    %37 = vector.shape_cast %36 : vector<2x8x8x64xf32> to vector<128x64xf32>
    %38 = arith.truncf %37 : vector<128x64xf32> to vector<128x64xbf16>
    %c0_38 = arith.constant 0 : index
    %c448 = arith.constant 448 : index
    %39 = vector.load %arg9[%c0_38, %c448] : memref<128x576xbf16, #tpu.memory_space<vmem>>, vector<128x64xbf16>
    tpu.vector_store %arg9[%c0_38, %c448], %38 {strides = array<i32>} : memref<128x576xbf16, #tpu.memory_space<vmem>>, vector<128x64xbf16>,
    %c0_39 = arith.constant 0 : index
    %c1_40 = arith.constant 1 : index
    %c1_41 = arith.constant 1 : index
    %c0_42 = arith.constant 0 : index
    %40 = vector.load %arg1[%c0_39, %c1_40, %c1_41, %c0_42] : memref<2x9x9x64xbf16, #tpu.memory_space<vmem>>, vector<2x8x8x64xbf16>
    %41 = arith.extf %40 : vector<2x8x8x64xbf16> to vector<2x8x8x64xf32>
    %42 = vector.shape_cast %41 : vector<2x8x8x64xf32> to vector<128x64xf32>
    %43 = arith.truncf %42 : vector<128x64xf32> to vector<128x64xbf16>
    %c0_43 = arith.constant 0 : index
    %c512 = arith.constant 512 : index
    %44 = vector.load %arg9[%c0_43, %c512] : memref<128x576xbf16, #tpu.memory_space<vmem>>, vector<128x64xbf16>
    tpu.vector_store %arg9[%c0_43, %c512], %43 {strides = array<i32>} : memref<128x576xbf16, #tpu.memory_space<vmem>>, vector<128x64xbf16>,
    %c0_44 = arith.constant 0 : index
    %c0_45 = arith.constant 0 : index
    %45 = vector.load %arg9[%c0_44, %c0_45] : memref<128x576xbf16, #tpu.memory_space<vmem>>, vector<128x576xbf16>
    %c0_46 = arith.constant 0 : index
    %c0_47 = arith.constant 0 : index
    %46 = vector.load %arg5[%c0_46, %c0_47] : memref<576x128xbf16, #tpu.memory_space<vmem>>, vector<576x128xbf16>
    %cst = arith.constant dense<0.000000e+00> : vector<128x128xf32>
    %47 = tpu.matmul %45, %46, %cst {dimension_numbers = #tpu.dot_dimension_numbers<[1], [0], [0], [1], [0, 0, 1, 1], [], []>} : vector<128x576xbf16>, vector<576x128xbf16>, vector<128x128xf32> -> vector<128x128xf32>
    %48 = arith.truncf %47 : vector<128x128xf32> to vector<128x128xbf16>
    %c0_48 = arith.constant 0 : index
    %c0_49 = arith.constant 0 : index
    %49 = vector.load %arg6[%c0_48, %c0_49] : memref<128x128xbf16, #tpu.memory_space<vmem>>, vector<128x128xbf16>
    tpu.vector_store %arg6[%c0_48, %c0_49], %48 {strides = array<i32>} : memref<128x128xbf16, #tpu.memory_space<vmem>>, vector<128x128xbf16>,
    %cst_50 = arith.constant dense<0.000000e+00> : vector<128xf32>
    %50 = vector.multi_reduction <add>, %47, %cst_50 [0] : vector<128x128xf32> to vector<128xf32>
    %51 = vector.shape_cast %50 : vector<128xf32> to vector<1x128xf32>
    %c0_51 = arith.constant 0 : index
    %c0_52 = arith.constant 0 : index
    %c0_53 = arith.constant 0 : index
    %52 = vector.load %arg7[%c0_51, %c0_52, %c0_53] : memref<1x1x128xf32, #tpu.memory_space<vmem>>, vector<1x1x128xf32>
    %53 = vector.shape_cast %52 : vector<1x1x128xf32> to vector<1x128xf32>
    %54 = vector.shape_cast %51 : vector<1x128xf32> to vector<1x1x128xf32>
    tpu.vector_store %arg7[%c0_51, %c0_52, %c0_53], %54 {strides = array<i32>} : memref<1x1x128xf32, #tpu.memory_space<vmem>>, vector<1x1x128xf32>,
    %55 = arith.mulf %47, %47 : vector<128x128xf32>
    %cst_54 = arith.constant dense<0.000000e+00> : vector<128xf32>
    %56 = vector.multi_reduction <add>, %55, %cst_54 [0] : vector<128x128xf32> to vector<128xf32>
    %57 = vector.shape_cast %56 : vector<128xf32> to vector<1x128xf32>
    %c0_55 = arith.constant 0 : index
    %c0_56 = arith.constant 0 : index
    %c0_57 = arith.constant 0 : index
    %58 = vector.load %arg8[%c0_55, %c0_56, %c0_57] : memref<1x1x128xf32, #tpu.memory_space<vmem>>, vector<1x1x128xf32>
    %59 = vector.shape_cast %58 : vector<1x1x128xf32> to vector<1x128xf32>
    %60 = vector.shape_cast %57 : vector<1x128xf32> to vector<1x1x128xf32>
    tpu.vector_store %arg8[%c0_55, %c0_56, %c0_57], %60 {strides = array<i32>} : memref<1x1x128xf32, #tpu.memory_space<vmem>>, vector<1x1x128xf32>,
    return
  }
  func.func @transform_0(%arg0: i32) -> (i32, i32, i32, i32) {
    %c0_i32 = arith.constant 0 : i32
    %c0_i32_0 = arith.constant 0 : i32
    %c0_i32_1 = arith.constant 0 : i32
    %c0_i32_2 = arith.constant 0 : i32
    return %arg0, %c0_i32, %c0_i32_0, %c0_i32_1 : i32, i32, i32, i32
  }
  func.func @transform_1(%arg0: i32) -> (i32, i32, i32, i32) {
    %c0_i32 = arith.constant 0 : i32
    %c0_i32_0 = arith.constant 0 : i32
    %c0_i32_1 = arith.constant 0 : i32
    %c0_i32_2 = arith.constant 0 : i32
    return %arg0, %c0_i32, %c0_i32_0, %c0_i32_1 : i32, i32, i32, i32
  }
  func.func @transform_2(%arg0: i32) -> (i32, i32, i32, i32) {
    %c0_i32 = arith.constant 0 : i32
    %c0_i32_0 = arith.constant 0 : i32
    %c0_i32_1 = arith.constant 0 : i32
    %c0_i32_2 = arith.constant 0 : i32
    return %arg0, %c0_i32, %c0_i32_0, %c0_i32_1 : i32, i32, i32, i32
  }
  func.func @transform_3(%arg0: i32) -> (i32, i32, i32, i32) {
    %c0_i32 = arith.constant 0 : i32
    %c0_i32_0 = arith.constant 0 : i32
    %c0_i32_1 = arith.constant 0 : i32
    %c0_i32_2 = arith.constant 0 : i32
    return %arg0, %c0_i32, %c0_i32_0, %c0_i32_1 : i32, i32, i32, i32
  }
  func.func @transform_4(%arg0: i32) -> (i32, i32) {
    %c0_i32 = arith.constant 0 : i32
    %c0_i32_0 = arith.constant 0 : i32
    %c0_i32_1 = arith.constant 0 : i32
    return %c0_i32, %c0_i32_0 : i32, i32
  }
  func.func @transform_5(%arg0: i32) -> (i32, i32) {
    %c0_i32 = arith.constant 0 : i32
    %c0_i32_0 = arith.constant 0 : i32
    return %arg0, %c0_i32 : i32, i32
  }
  func.func @transform_6(%arg0: i32) -> (i32, i32, i32) {
    %c0_i32 = arith.constant 0 : i32
    %c0_i32_0 = arith.constant 0 : i32
    %c0_i32_1 = arith.constant 0 : i32
    return %arg0, %c0_i32, %c0_i32_0 : i32, i32, i32
  }
  func.func @transform_7(%arg0: i32) -> (i32, i32, i32) {
    %c0_i32 = arith.constant 0 : i32
    %c0_i32_0 = arith.constant 0 : i32
    %c0_i32_1 = arith.constant 0 : i32
    return %arg0, %c0_i32, %c0_i32_0 : i32, i32, i32
  }
}

</mosaic_0001>

<bundles_post_ra>
// kernel: tpu_custom_call.1
= control target key start
LH: loop header
LB: loop body
LE: loop exit
PB: predicated region body
PF: predicated region fallthrough
CT: control target
= control target key end

     0   :  { %13 = vsyncpa [#allocation4], 0  ;;  %s3700_s0 = inlined_call_operand.vmem [shape: bf16[4,9,9,64], index: 0, kind: input, shape index: {}]   ;;  %s3701_s1 = inlined_call_operand.vmem [shape: bf16[4,9,9,64], index: 1, kind: input, shape index: {}]   ;;  %s3702_s2 = inlined_call_operand.vmem [shape: bf16[4,9,9,64], index: 2, kind: input, shape index: {}]   ;;  %s3703_s3 = inlined_call_operand.vmem [shape: bf16[4,9,9,64], index: 3, kind: input, shape index: {}]   ;;  %s3704_s4 = inlined_call_operand.vmem [shape: bf16[576,128], index: 4, kind: input, shape index: {}]   ;;  %s3705_s5 = inlined_call_operand.hbm [shape: bf16[256,128], index: 5, kind: output, shape index: {0}]   ;;  %s3706_s6 = inlined_call_operand.hbm [shape: f32[2,1,128], index: 6, kind: output, shape index: {1}]   ;;  %s3707_s7 = inlined_call_operand.hbm [shape: f32[2,1,128], index: 7, kind: output, shape index: {2}]  }
   0x1   :  { %15 = vsyncpa [#allocation4 + $0x1], 0 }
   0x2   :  { %16 = vsyncpa [#allocation6], 0 }
   0x3   :  { %18 = vsyncpa [#allocation6 + $0x1], 0  ;;  %s3039_s24 = smov 0   ;;  %s3041_s25 = smov 0  }
   0x4   :  { %s3043_s26 = smov 0   ;;  %s3045_s27 = smov 0  }
   0x5 LB: > { %s3060_s28 = sadd.s32 4294967295, %s2992_s27   ;;  %s3708_s29 = sadd.s32 4294967294, %s2992_s27   ;;  %s2992_s27 = sphi %s3045_s27, %s3717_s27   ;;  %s2988_s26 = sphi %s3043_s26, %s3716_s26   ;;  %s2984_s25 = sphi %s3041_s25, %s3715_s25   ;;  %s2980_s24 = sphi %s3039_s24, %s3714_s24  }
   0x6   : > { %s3064_s30 = sadd.s32 1, %s2992_s27   ;;  %s156_s8 = sadd.s32 1, %s2988_s26 }
   0x7   : > { %s153_s9 = ssub.s32 %s2992_s27, %s3064_s30  ;;  %p166_p0 = scmp.ne.s32.totalorder %s2988_s26, %s2984_s25 }
   0x8   : > { %p154_p1 = scmp.eq.s32.totalorder %s153_s9, 0  ;;  %p167_p2 = scmp.eq.s32.totalorder %s3060_s28, 1 }
   0x9   : > { %p172_p3 = scmp.ne.s32.totalorder %s2984_s25, %s2980_s24  ;;  %p173_p4 = scmp.eq.s32.totalorder %s3708_s29, 1 }
   0xa   : > { %s3077_s10 = scalar_select %p154_p1, %s2988_s26, %s156_s8  }
   0xb   : > { %p3079_p5 = por %p167_p2, %p166_p0  ;;  %p3083_p6 = por %p173_p4, %p172_p3 }
   0xc   : > { %p2309_p7 = scmp.ge.s32.totalorder %s2992_s27, 1  ;;  %p286_p8 = scmp.lt.s32.totalorder %s2992_s27, 3 }
   0xe   : > { %p287_p9 = pnand %p2309_p7, %p286_p8 }
   0xf   : > { %s2311_s13 = sshll.u32 (!%p287_p9), %s3060_s28, 1  ;;  %v2810_v0 = vld [vmem:[%s3704_s4 + $0x40] sm:$0xff] (!%p287_p9)   ;;  %v2812_v2 = vld [vmem:[%s3704_s4 + $0x48] sm:$0xff] (!%p287_p9)   ;;  %v2814_v4 = vld [vmem:[%s3704_s4 + $0x50] sm:$0xff] (!%p287_p9)   ;;  %s2994_s23 = smov (!%p287_p9), 64   ;;  %vm601_vm0 = vcmask (!%p287_p9), 1046528  }
  0x10   : > { %290 = sbr.rel (%p287_p9) target bundleno = 526 (0x20e), region = 40  ;;  %p346_p10 = scmp.lt.s32.totalorder (!%p287_p9), %s2311_s13, 3  ;;  %v2811_v1 = vld [vmem:[%s3704_s4] sm:$0xff] (!%p287_p9)   ;;  %2562 = vmatprep.subr.bf16.mxu0 (!%p287_p9), %v2810_v0  ;;  %v2813_v3 = vld [vmem:[%s3704_s4 + $0x8] sm:$0xff] (!%p287_p9)   ;;  %v2815_v5 = vld [vmem:[%s3704_s4 + $0x10] sm:$0xff] (!%p287_p9)   ;;  %vm415_vm1 = vcmask (!%p287_p9), 523264  }
  0x11   : > { %2563 = vmatpush3.bf16.msra.mxu0 (!%p287_p9), %v2811_v1  ;;  %v2816_v6 = vld [vmem:[%s3704_s4 + $0xc0] sm:$0xff] (!%p287_p9)   ;;  %vm496_vm2 = vcmask (!%p287_p9), 1048064   ;;  %s3541_s16 = sand.u32 (!%p287_p9), 1, %s2984_s25   ;;  %s2514_s18 = sshll.u32 (!%p287_p9), %s3060_s28, 10 }
  0x12   : > { %2564 = vmatprep.subr.bf16.mxu0 (!%p287_p9), %v2812_v2  ;;  %2626 = vmatprep.subr.bf16.mxu1 (!%p287_p9), %v2816_v6  ;;  %s2108_s14 = scalar_lea.sflag (!%p287_p9), [#allocation4], %s3541_s16 }
  0x15   : > { %2565 = vmatpush3.bf16.msra.mxu0 (!%p287_p9), %v2813_v3  ;;  %v2817_v3 = vld [vmem:[%s3704_s4 + $0x80] sm:$0xff] (!%p287_p9)  }
  0x16   : > { %2566 = vmatprep.subr.bf16.mxu0 (!%p287_p9), %v2814_v4  ;;  %v2818_v4 = vld [vmem:[%s3704_s4 + $0x58] sm:$0xff] (!%p287_p9)   ;;  %2627 = vmatpush3.bf16.msra.mxu1 (!%p287_p9), %v2817_v3 }
  0x17   : > { %s3719_s13 = smov (!%p346_p10, %s2311_s13), 3 }
  0x18   : > { %s3102_s22 = smul.u32 72, %s3719_s13 }
  0x19   : > { %2567 = vmatpush3.bf16.msra.mxu0 %v2815_v5 }
  0x1a   : > { %s3114_s17 = scalar_lea.vmem %s3702_s2, %s3102_s22  ;;  %s3124_s21 = scalar_lea.vmem %s3701_s1, %s3102_s22  ;;  %2568 = vmatprep.subr.bf16.mxu0 %v2818_v4 }
  0x1b   : > { %v2786_v7 = vld [vmem:[%s3114_s17 + $0x10] ss:$8 sps:$4 sm:$0xff]   ;;  %v2787_v8 = vld [vmem:[%s3114_s17] ss:$8 sps:$4 sm:$0xff]   ;;  %v811_v13 = vld [vmem:[%s3114_s17 + $0x4] sm:$0x1]  ;;  %s3229_s8 = scalar_lea.vmem %s3700_s0, %s3102_s22  ;;  %s3319_s9 = scalar_lea.vmem %s3703_s3, %s3102_s22 }
  0x1c   : > { %732 = vrot.lane.b32.xlu1 %v2786_v7, %s2994_s23  ;;  %v2788_v9 = vld [vmem:[%s3124_s21 + $0x10] ss:$8 sps:$4 sm:$0xff]   ;;  %730 = vrot.lane.b32.xlu0 %v2787_v8, %s2994_s23  ;;  %v2789_v10 = vld [vmem:[%s3124_s21] ss:$8 sps:$4 sm:$0xff]   ;;  %v843_v17 = vunpack.c.l.bf16 %v811_v13  ;;  %s2995_s22 = smov [#allocation3]  }
  0x1d   : > { %v2790_v11 = vld [vmem:[%s3124_s21 + $0x8] ss:$8 sps:$4 sm:$0xff]   ;;  %v813_v14 = vld [vmem:[%s3114_s17 + $0xc] sm:$0x1]  ;;  %v815_v28 = vld [vmem:[%s3114_s17 + $0x14] sm:$0x1] }
  0x1e   : > { %v810_v12 = vld [vmem:[%s3114_s17] ss:$8 sps:$4 sm:$0xff]   ;;  %v845_v19 = vunpack.c.l.bf16 %v813_v14  ;;  %v907_v21 = vrot.slane %v843_v17, 1  ;;  %v814_v25 = vld [vmem:[%s3114_s17 + $0x10] ss:$8 sps:$4 sm:$0xff]   ;;  %v847_v33 = vunpack.c.l.bf16 %v815_v28  ;;  %s2874_s15 = sshll.u32 %s2995_s22, 4  ;;  %s2875_s15 = int_to_ptr.vmem [resolvable:$false] %s2874_s15 }
  0x1f   : > { %v2791_v15 = vld [vmem:[%s3114_s17 + $0x20] ss:$8 sps:$4 sm:$0xff]   ;;  %v842_v16 = vunpack.c.l.bf16 %v810_v12  ;;  %v844_v18 = vunpack.c.h.bf16 %v810_v12  ;;  %v817_v29 = vld [vmem:[%s3114_s17 + $0x1c] sm:$0x1]  ;;  %v846_v30 = vunpack.c.l.bf16 %v814_v25  ;;  %v848_v31 = vunpack.c.h.bf16 %v814_v25  ;;  %v2794_v40 = vld [vmem:[%s3114_s17 + $0x30] ss:$8 sps:$4 sm:$0xff]  }
  0x20   : > { %474 = vrot.lane.b32.xlu1 %v2788_v9, %s2994_s23  ;;  %472 = vrot.lane.b32.xlu0 %v2789_v10, %s2994_s23  ;;  %v910_v23 = vrot.slane %v845_v19, 1  ;;  %v2792_v24 = vld [vmem:[%s3124_s21 + $0x20] ss:$8 sps:$4 sm:$0xff]   ;;  %v849_v34 = vunpack.c.l.bf16 %v817_v29  ;;  %v913_v38 = vrot.slane %v847_v33, 1  ;;  %v819_v42 = vld [vmem:[%s3114_s17 + $0x24] sm:$0x1] }
  0x21   : > { %v906_v20 = vrot.slane %v842_v16, 1  ;;  %v909_v22 = vrot.slane %v844_v18, 1  ;;  %v2793_v35 = vld [vmem:[%s3124_s21 + $0x18] ss:$8 sps:$4 sm:$0xff]   ;;  %v912_v36 = vrot.slane %v846_v30, 1  ;;  %v915_v37 = vrot.slane %v848_v31, 1 }
  0x22   : > { %v916_v39 = vrot.slane %v849_v34, 1  ;;  %v818_v41 = vld [vmem:[%s3114_s17 + $0x20] ss:$8 sps:$4 sm:$0xff]   ;;  %v821_v45 = vld [vmem:[%s3114_s17 + $0x2c] sm:$0x1]  ;;  %v851_v47 = vunpack.c.l.bf16 %v819_v42  ;;  %v2819_v14 = vld [vmem:[%s3704_s4 + $0x18] sm:$0xff]  }
  0x23   : > { %v908_v26 = vsel %vm601_vm0, %v906_v20, %v907_v21  ;;  %v911_v27 = vsel %vm601_vm0, %v909_v22, %v910_v23  ;;  %v914_v43 = vsel %vm601_vm0, %v912_v36, %v913_v38  ;;  %v850_v46 = vunpack.c.l.bf16 %v818_v41  ;;  %v2795_v51 = vld [vmem:[%s3124_s21 + $0x30] ss:$8 sps:$4 sm:$0xff]   ;;  %v823_v57 = vld [vmem:[%s3114_s17 + $0x34] sm:$0x1]  ;;  %v825_v58 = vld [vmem:[%s3114_s17 + $0x3c] sm:$0x1]  ;;  %2569 = vmatpush3.bf16.msra.mxu0 %v2819_v14 }
  0x24   : > { %1116 = vrot.lane.b32.xlu1 %v2790_v11, %s2994_s23  ;;  %734 = vrot.lane.b32.xlu0 %v2791_v15, %s2994_s23  ;;  %v970_v32 = vpack.c.bf16 %v911_v27, %v908_v26  ;;  %v917_v44 = vsel %vm601_vm0, %v915_v37, %v916_v39  ;;  %v852_v48 = vunpack.c.h.bf16 %v818_v41  ;;  %v853_v49 = vunpack.c.l.bf16 %v821_v45  ;;  %v822_v56 = vld [vmem:[%s3114_s17 + $0x30] ss:$8 sps:$4 sm:$0xff]   ;;  %v827_v10 = vld [vmem:[%s3114_s17 + $0x4c] sm:$0x1] }
  0x25   : > { %v971_v50 = vpack.c.bf16 %v917_v44, %v914_v43  ;;  %v918_v52 = vrot.slane %v850_v46, 1  ;;  %v919_v53 = vrot.slane %v851_v47, 1  ;;  %v854_v59 = vunpack.c.l.bf16 %v822_v56  ;;  %v2796_v61 = vld [vmem:[%s3124_s21 + $0x28] ss:$8 sps:$4 sm:$0xff]   ;;  %v829_v13 = vld [vmem:[%s3114_s17 + $0x54] sm:$0x1] }
  0x26   : > { %v921_v54 = vrot.slane %v852_v48, 1  ;;  %v922_v55 = vrot.slane %v853_v49, 1  ;;  %v855_v60 = vunpack.c.l.bf16 %v823_v57  ;;  %v2797_v62 = vld [vmem:[%s3114_s17 + $0x48] ss:$8 sps:$4 sm:$0xff]   ;;  %v856_v1 = vunpack.c.h.bf16 %v822_v56  ;;  %v2799_v15 = vld [vmem:[%s3124_s21 + $0x38] ss:$8 sps:$4 sm:$0xff]  }
  0x27   : > { %v920_v63 = vsel %vm601_vm0, %v918_v52, %v919_v53  ;;  %v857_v2 = vunpack.c.l.bf16 %v825_v58  ;;  %v2798_v5 = vld [vmem:[%s3124_s21 + $0x48] ss:$8 sps:$4 sm:$0xff]   ;;  %v924_v6 = vrot.slane %v854_v59, 1  ;;  %v859_v17 = vunpack.c.l.bf16 %v827_v10  ;;  %v830_v20 = vld [vmem:[%s3114_s17 + $0x58] ss:$8 sps:$4 sm:$0xff]  }
  0x28   : > { %986 = vrot.lane.b32.xlu1 %v970_v32, %s2994_s23  ;;  %476 = vrot.lane.b32.xlu0 %v2792_v24, %s2994_s23  ;;  %v923_v0 = vsel %vm601_vm0, %v921_v54, %v922_v55  ;;  %v925_v7 = vrot.slane %v855_v60, 1  ;;  %v826_v8 = vld [vmem:[%s3114_s17 + $0x48] ss:$8 sps:$4 sm:$0xff]   ;;  %v927_v11 = vrot.slane %v856_v1, 1  ;;  %v831_v21 = vld [vmem:[%s3114_s17 + $0x5c] sm:$0x1]  ;;  %v861_v26 = vunpack.c.l.bf16 %v829_v13 }
  0x29   : > { %v972_v9 = vpack.c.bf16 %v923_v0, %v920_v63  ;;  %v928_v12 = vrot.slane %v857_v2, 1  ;;  %v858_v16 = vunpack.c.l.bf16 %v826_v8  ;;  %v2820_v18 = vld [vmem:[%s3704_s4 + $0xc8] sm:$0xff]   ;;  %v860_v19 = vunpack.c.h.bf16 %v826_v8  ;;  %v833_v22 = vld [vmem:[%s3114_s17 + $0x64] sm:$0x1]  ;;  %v2800_v23 = vld [vmem:[%s3114_s17 + $0x58] ss:$8 sps:$4 sm:$0xff]  }
  0x2a   : > { %v926_v24 = vsel %vm601_vm0, %v924_v6, %v925_v7  ;;  %v862_v27 = vunpack.c.l.bf16 %v830_v20  ;;  %2628 = vmatprep.subr.bf16.mxu1 %v2820_v18  ;;  %v863_v28 = vunpack.c.l.bf16 %v831_v21  ;;  %v864_v29 = vunpack.c.h.bf16 %v830_v20  ;;  %v2801_v30 = vld [vmem:[%s3124_s21 + $0x58] ss:$8 sps:$4 sm:$0xff]   ;;  %v834_v34 = vld [vmem:[%s3114_s17 + $0x68] ss:$8 sps:$4 sm:$0xff]   ;;  %v835_v38 = vld [vmem:[%s3114_s17 + $0x6c] sm:$0x1] }
  0x2b   : > { %v929_v25 = vsel %vm601_vm0, %v927_v11, %v928_v12  ;;  %v930_v31 = vrot.slane %v858_v16, 1  ;;  %v931_v32 = vrot.slane %v859_v17, 1  ;;  %v865_v33 = vunpack.c.l.bf16 %v833_v22  ;;  %v837_v39 = vld [vmem:[%s3114_s17 + $0x74] sm:$0x1]  ;;  %v2822_v41 = vld [vmem:[%s3704_s4 + $0x60] sm:$0xff]   ;;  %v2826_v12 = vld [vmem:[%s3704_s4 + $0x68] sm:$0xff]  }
  0x2c   : > { %1118 = vrot.lane.b32.xlu1 %v2793_v35, %s2994_s23  ;;  %736 = vrot.lane.b32.xlu0 %v2794_v40, %s2994_s23  ;;  %v2821_v35 = vld [vmem:[%s3704_s4 + $0x88] sm:$0xff]   ;;  %v973_v36 = vpack.c.bf16 %v929_v25, %v926_v24  ;;  %v933_v37 = vrot.slane %v860_v19, 1  ;;  %v866_v40 = vunpack.c.l.bf16 %v834_v34  ;;  %v934_v42 = vrot.slane %v861_v26, 1  ;;  %v2802_v45 = vld [vmem:[%s3124_s21 + $0x50] ss:$8 sps:$4 sm:$0xff]  }
  0x2d   : > { %v936_v43 = vrot.slane %v862_v27, 1  ;;  %v868_v44 = vunpack.c.h.bf16 %v834_v34  ;;  %2629 = vmatpush3.bf16.msra.mxu1 %v2821_v35  ;;  %v937_v46 = vrot.slane %v863_v28, 1  ;;  %v939_v47 = vrot.slane %v864_v29, 1  ;;  %2570 = vmatprep.subr.bf16.mxu0 %v2822_v41  ;;  %v839_v54 = vld [vmem:[%s3114_s17 + $0x7c] sm:$0x1]  ;;  %v2823_v59 = vld [vmem:[%s3704_s4 + $0x20] sm:$0xff]  }
  0x2e   : > { %v867_v48 = vunpack.c.l.bf16 %v835_v38  ;;  %v869_v49 = vunpack.c.l.bf16 %v837_v39  ;;  %v940_v52 = vrot.slane %v865_v33, 1  ;;  %v942_v53 = vrot.slane %v866_v40, 1  ;;  %v2824_v0 = vld [vmem:[%s3704_s4 + $0xd0] sm:$0xff]   ;;  %v841_v2 = vld [vmem:[%s3114_s17 + $0x84] sm:$0x1]  ;;  %2571 = vmatpush3.bf16.msra.mxu0 %v2823_v59  ;;  %v2828_v41 = vld [vmem:[%s3704_s4 + $0xd8] sm:$0xff]  }
  0x2f   : > { %v932_v56 = vsel %vm601_vm0, %v930_v31, %v931_v32  ;;  %v935_v57 = vsel %vm601_vm0, %v933_v37, %v934_v42  ;;  %v945_v58 = vrot.slane %v868_v44, 1  ;;  %v2804_v1 = vld [vmem:[%s3124_s21 + $0x68] ss:$8 sps:$4 sm:$0xff]   ;;  %2630 = vmatprep.subr.bf16.mxu1 %v2824_v0  ;;  %v2806_v8 = vld [vmem:[%s3114_s17 + $0x78] ss:$8 sps:$4 sm:$0xff]   ;;  %2572 = vmatprep.subr.bf16.mxu0 %v2826_v12 }
  0x30   : > { %988 = vrot.lane.b32.xlu1 %v971_v50, %s2994_s23  ;;  %478 = vrot.lane.b32.xlu0 %v2795_v51, %s2994_s23  ;;  %v838_v50 = vld [vmem:[%s3114_s17 + $0x78] ss:$8 sps:$4 sm:$0xff]   ;;  %v2803_v51 = vld [vmem:[%s3114_s17 + $0x68] ss:$8 sps:$4 sm:$0xff]   ;;  %v943_v60 = vrot.slane %v867_v48, 1  ;;  %v974_v4 = vpack.c.bf16 %v935_v57, %v932_v56  ;;  %v941_v10 = vsel %vm601_vm0, %v939_v47, %v940_v52  ;;  %s2310_s17 = sshll.u32 %s3541_s16, 6 }
  0x31   : > { %v870_v55 = vunpack.c.l.bf16 %v838_v50  ;;  %v872_v3 = vunpack.c.h.bf16 %v838_v50  ;;  %v2825_v7 = vld [vmem:[%s3704_s4 + $0x90] sm:$0xff]   ;;  %v512_v16 = vld [vmem:[%s3229_s8 + $0x1c] sm:$0x1]  ;;  %v505_v20 = vld [vmem:[%s3229_s8] ss:$8 sps:$4 sm:$0xff]   ;;  %s3548_s13 = scalar_lea.vmem [#allocation3], %s2310_s17 }
  0x32   : > { %v509_v13 = vld [vmem:[%s3229_s8 + $0x10] ss:$8 sps:$4 sm:$0xff]   ;;  %v510_v14 = vld [vmem:[%s3229_s8 + $0x14] sm:$0x1]  ;;  %2631 = vmatpush3.bf16.msra.mxu1 %v2825_v7  ;;  %v506_v21 = vld [vmem:[%s3229_s8 + $0x4] sm:$0x1]  ;;  %v544_v22 = vunpack.c.l.bf16 %v512_v16  ;;  %v537_v24 = vunpack.c.l.bf16 %v505_v20  ;;  %v539_v26 = vunpack.c.h.bf16 %v505_v20  ;;  %v944_v38 = vsel %vm601_vm0, %v942_v53, %v943_v60 }
  0x33   : > { %v3217_v63 = vrot.slane %v870_v55, 1  ;;  %v951_v11 = vrot.slane %v872_v3, 1  ;;  %v541_v17 = vunpack.c.l.bf16 %v509_v13  ;;  %v542_v18 = vunpack.c.l.bf16 %v510_v14  ;;  %v2827_v31 = vld [vmem:[%s3704_s4 + $0x28] sm:$0xff]   ;;  %v2807_v32 = vld [vmem:[%s3124_s21 + $0x78] ss:$8 sps:$4 sm:$0xff]   ;;  %2632 = vmatprep.subr.bf16.mxu1 %v2828_v41  ;;  %v2833_v57 = vld [vmem:[%s3704_s4 + $0x30] sm:$0xff]  }
  0x34   : > { %1120 = vrot.lane.b32.xlu1 %v2796_v61, %s2994_s23  ;;  %738 = vrot.lane.b32.xlu0 %v2797_v62, %s2994_s23  ;;  %v946_v61 = vrot.slane %v869_v49, 1  ;;  %v871_v62 = vunpack.c.l.bf16 %v839_v54  ;;  %v543_v19 = vunpack.c.h.bf16 %v509_v13  ;;  %v538_v25 = vunpack.c.l.bf16 %v506_v21  ;;  %v2830_v49 = vld [vmem:[%s3704_s4 + $0x70] sm:$0xff]   ;;  %v2832_v54 = vld [vmem:[%s3229_s8] ss:$8 sps:$4 sm:$0xff]   ;;  %s2129_s19 = sshll.u32 %s3548_s13, 4  ;;  %s2876_s17 = scalar_lea.vmem %s2875_s15, 2048  ;;  %s3577_s19 = int_to_ptr.vmem [resolvable:$true] %s2129_s19 }
  0x35   : > { %v608_v27 = vrot.slane %v541_v17, 1  ;;  %v609_v28 = vrot.slane %v542_v18, 1  ;;  %v612_v33 = vrot.slane %v544_v22, 1  ;;  %v602_v34 = vrot.slane %v537_v24, 1  ;;  %2573 = vmatpush3.bf16.msra.mxu0 %v2827_v31  ;;  %v2808_v50 = vld [vmem:[%s3124_s21 + $0x70] ss:$8 sps:$4 sm:$0xff]   ;;  %p2877_p0 = scmp.lt.s32.totalorder %s3577_s19, %s2875_s15 }
  0x36   : > { %v3233_v6 = vrot.slane %v871_v62, 1  ;;  %v611_v29 = vrot.slane %v543_v19, 1  ;;  %v603_v35 = vrot.slane %v538_v25, 1  ;;  %v947_v42 = vsel %vm601_vm0, %v945_v58, %v946_v61  ;;  %v2831_v52 = vld [vmem:[%s3229_s8 + $0x10] ss:$8 sps:$4 sm:$0xff]   ;;  %2574 = vmatprep.subr.bf16.mxu0 %v2830_v49  ;;  %416 = vst.msk [vmem:[#allocation2] sm:$0xff] %vm415_vm1, %v2832_v54 }
  0x37   : > { %v610_v39 = vsel %vm601_vm0, %v608_v27, %v609_v28  ;;  %v976_v53 = vpack.c.bf16 %v947_v42, %v944_v38  ;;  %417 = vst.msk [vmem:[#allocation2 + $0x28] sm:$0xff] %vm415_vm1, %v2831_v52  ;;  %v2834_v58 = vld [vmem:[%s3704_s4 + $0xe0] sm:$0xff]   ;;  %v2836_v62 = vld [vmem:[%s3704_s4 + $0x78] sm:$0xff]   ;;  %v2844_v17 = vld [vmem:[%s3704_s4 + $0xb0] sm:$0xff]  }
  0x38   : > { %990 = vrot.lane.b32.xlu1 %v972_v9, %s2994_s23  ;;  %480 = vrot.lane.b32.xlu0 %v2798_v5, %s2994_s23  ;;  %v2805_v5 = vld [vmem:[%s3124_s21 + $0x60] ss:$8 sps:$4 sm:$0xff]   ;;  %v938_v9 = vsel %vm601_vm0, %v936_v43, %v937_v46  ;;  %v613_v44 = vsel %vm601_vm0, %v611_v29, %v612_v33  ;;  %v2829_v46 = vld [vmem:[%s3704_s4 + $0x98] sm:$0xff]   ;;  %v950_v55 = vsel %vm601_vm0, %v3217_v63, %v3233_v6 }
  0x39   : > { %v975_v37 = vpack.c.bf16 %v941_v10, %v938_v9  ;;  %v667_v47 = vpack.c.bf16 %v613_v44, %v610_v39  ;;  %2633 = vmatpush3.bf16.msra.mxu1 %v2829_v46  ;;  %v2809_v59 = vld [vmem:[%s3124_s21 + $0x80] ss:$8 sps:$4 sm:$0xff]   ;;  %2575 = vmatpush3.bf16.msra.mxu0 %v2833_v57  ;;  %v2838_v0 = vld [vmem:[%s3704_s4 + $0x38] sm:$0xff]   ;;  %s2870_s21 = scalar_lea.vmem %s3577_s19, 1024 }
  0x3a   : > { %v2835_v60 = vld [vmem:[%s3704_s4 + $0xa0] sm:$0xff]   ;;  %2634 = vmatprep.subr.bf16.mxu1 %v2834_v58  ;;  %v2837_v63 = vld [vmem:[%s3229_s8 + $0x8] ss:$8 sps:$4 sm:$0xff]   ;;  %2576 = vmatprep.subr.bf16.mxu0 %v2836_v62  ;;  %v2848_v24 = vld [vmem:[%s3704_s4 + $0xb8] sm:$0xff]   ;;  %p2871_p11 = scmp.ne.s32.totalorder %s3577_s19, %s2870_s21  ;;  %p2878_p1 = scmp.lt.s32.totalorder %s2876_s17, %s2870_s21 }
  0x3b   : > { %675 = vst.msk [vmem:[#allocation2 + $0x30] sm:$0xff] %vm415_vm1, %v667_v47  ;;  %1059 = vst.msk [vmem:[#allocation2 + $0x18] sm:$0xff] %vm415_vm1, %v2837_v63  ;;  %v513_v3 = vld [vmem:[%s3229_s8 + $0x20] ss:$8 sps:$4 sm:$0xff]   ;;  %v517_v25 = vld [vmem:[%s3229_s8 + $0x30] ss:$8 sps:$4 sm:$0xff]  }
  0x3c   : > { %1122 = vrot.lane.b32.xlu1 %v2799_v15, %s2994_s23  ;;  %740 = vrot.lane.b32.xlu0 %v2800_v23, %s2994_s23  ;;  %v873_v15 = vunpack.c.l.bf16 %v841_v2  ;;  %v508_v23 = vld [vmem:[%s3229_s8 + $0xc] sm:$0x1]  ;;  %v545_v6 = vunpack.c.l.bf16 %v513_v3  ;;  %v3326_v10 = vld [vmem:[%s3704_s4 + $0x100] sm:$0xff]   ;;  %v549_v28 = vunpack.c.l.bf16 %v517_v25  ;;  %v551_v29 = vunpack.c.h.bf16 %v517_v25  ;;  %p2872_p12 = pnand %p2871_p11, %p3079_p5  ;;  %p2879_p2 = por %p2878_p1, %p2877_p0 }
  0x3d   : > { %2635 = vmatpush3.bf16.msra.mxu1 %v2835_v60  ;;  %2577 = vmatpush3.bf16.msra.mxu0 %v2838_v0  ;;  %v2840_v2 = vld [vmem:[%s3704_s4 + $0xa8] sm:$0xff]   ;;  %v2846_v22 = vld [vmem:[%s3229_s8 + $0x18] ss:$8 sps:$4 sm:$0xff]   ;;  %v520_v27 = vld [vmem:[%s3229_s8 + $0x3c] sm:$0x1] }
  0x3e   : > { %v952_v43 = vrot.slane %v873_v15, 1  ;;  %v2842_v14 = vld [vmem:[%s3319_s9] ss:$8 sps:$4 sm:$0xff]   ;;  %v2843_v15 = vld [vmem:[%s3704_s4 + $0xf0] sm:$0xff]   ;;  %2702 = vmatprep.subr.bf16.mxu0 %v3326_v10  ;;  %1060 = vst.msk [vmem:[#allocation2 + $0x40] sm:$0xff] %vm415_vm1, %v2846_v22  ;;  %v552_v31 = vunpack.c.l.bf16 %v520_v27  ;;  %v620_v33 = vrot.slane %v549_v28, 1  ;;  %p2873_p13 = pneg %p2872_p12 }
  0x3f   : > { %802 = vst.msk [vmem:[#allocation2 + $0x10] sm:$0xff] %vm415_vm1, %v2842_v14  ;;  %v2845_v20 = vld [vmem:[%s3229_s8 + $0x20] ss:$8 sps:$4 sm:$0xff]   ;;  %v528_v60 = vld [vmem:[%s3229_s8 + $0x64] sm:$0x1] }
  0x40   : > { %992 = vrot.lane.b32.xlu1 %v973_v36, %s2994_s23  ;;  %482 = vrot.lane.b32.xlu0 %v2801_v30, %s2994_s23  ;;  %v540_v30 = vunpack.c.l.bf16 %v508_v23  ;;  %v605_v36 = vrot.slane %v539_v26, 1  ;;  %v953_v56 = vsel %vm601_vm0, %v951_v11, %v952_v43  ;;  %v614_v11 = vrot.slane %v545_v6, 1  ;;  %418 = vst.msk [vmem:[#allocation2 + $0x50] sm:$0xff] %vm415_vm1, %v2845_v20  ;;  %v2847_v23 = vld [vmem:[%s3704_s4 + $0xf8] sm:$0xff]   ;;  %v518_v26 = vld [vmem:[%s3229_s8 + $0x34] sm:$0x1]  ;;  %p2880_p3 = pnand %p2879_p2, %p2873_p13 }
  0x41   : > { %v977_v61 = vpack.c.bf16 %v953_v56, %v950_v55  ;;  %v2851_v38 = vld [vmem:[%s3229_s8 + $0x28] ss:$8 sps:$4 sm:$0xff]   ;;  %v524_v43 = vld [vmem:[%s3229_s8 + $0x54] sm:$0x1]  ;;  %v2855_v56 = vld [vmem:[%s3229_s8 + $0x38] ss:$8 sps:$4 sm:$0xff]  }
  0x42   : > { %v606_v40 = vrot.slane %v540_v30, 1  ;;  %v550_v30 = vunpack.c.l.bf16 %v518_v26  ;;  %v521_v39 = vld [vmem:[%s3229_s8 + $0x48] ss:$8 sps:$4 sm:$0xff]   ;;  %1061 = vst.msk [vmem:[#allocation2 + $0x68] sm:$0xff] %vm415_vm1, %v2851_v38  ;;  %v525_v58 = vld [vmem:[%s3229_s8 + $0x58] ss:$8 sps:$4 sm:$0xff]  }
  0x43   : > { %v553_v44 = vunpack.c.l.bf16 %v521_v39  ;;  %v555_v47 = vunpack.c.h.bf16 %v521_v39  ;;  %v2852_v49 = vld [vmem:[%s3319_s9 + $0x20] ss:$8 sps:$4 sm:$0xff]   ;;  %1062 = vst.msk [vmem:[#allocation2 + $0x90] sm:$0xff] %vm415_vm1, %v2855_v56  ;;  %v557_v62 = vunpack.c.l.bf16 %v525_v58  ;;  %v559_v0 = vunpack.c.h.bf16 %v525_v58  ;;  %v2404_v58 = vld [vmem:[%s3229_s8 + $0x1c] sm:$0x1] }
  0x44   : > { %1124 = vrot.lane.b32.xlu1 %v2802_v45, %s2994_s23  ;;  %742 = vrot.lane.b32.xlu0 %v2803_v51, %s2994_s23  ;;  %v604_v45 = vsel %vm601_vm0, %v602_v34, %v603_v35  ;;  %v607_v48 = vsel %vm601_vm0, %v605_v36, %v606_v40  ;;  %v623_v34 = vrot.slane %v551_v29, 1  ;;  %v2850_v35 = vld [vmem:[%s3229_s8 + $0x30] ss:$8 sps:$4 sm:$0xff]   ;;  %v621_v36 = vrot.slane %v550_v30, 1  ;;  %v522_v40 = vld [vmem:[%s3229_s8 + $0x4c] sm:$0x1] }
  0x45   : > { %v666_v51 = vpack.c.bf16 %v607_v48, %v604_v45  ;;  %419 = vst.msk [vmem:[#allocation2 + $0x78] sm:$0xff] %vm415_vm1, %v2850_v35  ;;  %v554_v45 = vunpack.c.l.bf16 %v522_v40  ;;  %v556_v48 = vunpack.c.l.bf16 %v524_v43  ;;  %v629_v52 = vrot.slane %v555_v47, 1  ;;  %804 = vst.msk [vmem:[#allocation2 + $0x60] sm:$0xff] %vm415_vm1, %v2852_v49  ;;  %v2854_v54 = vld [vmem:[%s3229_s8 + $0x48] ss:$8 sps:$4 sm:$0xff]  }
  0x46   : > { %v622_v41 = vsel %vm601_vm0, %v620_v33, %v621_v36  ;;  %420 = vst.msk [vmem:[#allocation2 + $0xa0] sm:$0xff] %vm415_vm1, %v2854_v54  ;;  %v635_v6 = vrot.slane %v559_v0, 1  ;;  %v2861_v25 = vld [vmem:[%s3229_s8 + $0x68] ss:$8 sps:$4 sm:$0xff]   ;;  %v533_v28 = vld [vmem:[%s3229_s8 + $0x78] ss:$8 sps:$4 sm:$0xff]  }
  0x47   : > { %674 = vst.msk [vmem:[#allocation2 + $0x8] sm:$0xff] %vm415_vm1, %v666_v51  ;;  %v627_v51 = vrot.slane %v554_v45, 1  ;;  %v2862_v27 = vld [vmem:[%s3229_s8 + $0x60] ss:$8 sps:$4 sm:$0xff]   ;;  %422 = vst.msk [vmem:[#allocation2 + $0xf0] sm:$0xff] %vm415_vm1, %v2861_v25  ;;  %v567_v33 = vunpack.c.h.bf16 %v533_v28 }
  0x48   : > { %994 = vrot.lane.b32.xlu1 %v974_v4, %s2994_s23  ;;  %484 = vrot.lane.b32.xlu0 %v2804_v1, %s2994_s23  ;;  %v2839_v1 = vld [vmem:[%s3704_s4 + $0xe8] sm:$0xff]   ;;  %v514_v4 = vld [vmem:[%s3229_s8 + $0x24] sm:$0x1]  ;;  %1064 = vst.msk [vmem:[#allocation2 + $0xe0] sm:$0xff] %vm415_vm1, %v2862_v27 }
  0x49   : > { %2636 = vmatprep.subr.bf16.mxu1 %v2839_v1  ;;  %v546_v7 = vunpack.c.l.bf16 %v514_v4  ;;  %v2856_v1 = vld [vmem:[%s3319_s9 + $0x30] ss:$8 sps:$4 sm:$0xff]   ;;  %v632_v4 = vrot.slane %v557_v62, 1  ;;  %v534_v30 = vld [vmem:[%s3229_s8 + $0x7c] sm:$0x1]  ;;  %v647_v39 = vrot.slane %v567_v33, 1 }
  0x4a   : > { %2637 = vmatpush3.bf16.msra.mxu1 %v2840_v2  ;;  %v560_v2 = vunpack.c.l.bf16 %v528_v60  ;;  %805 = vst.msk [vmem:[#allocation2 + $0x88] sm:$0xff] %vm415_vm1, %v2856_v1  ;;  %v566_v35 = vunpack.c.l.bf16 %v534_v30  ;;  %v2864_v40 = vld [vmem:[%s3229_s8 + $0x78] ss:$8 sps:$4 sm:$0xff]   ;;  %v2407_v0 = vld [vmem:[%s3229_s8 + $0x28] ss:$8 sps:$4 sm:$0xff]  }
  0x4b   : > { %v615_v12 = vrot.slane %v546_v7, 1  ;;  %2638 = vmatprep.subr.bf16.mxu1 %v2843_v15  ;;  %423 = vst.msk [vmem:[#allocation2 + $0x118] sm:$0xff] %vm415_vm1, %v2864_v40  ;;  %v2865_v43 = vld [vmem:[%s3229_s8 + $0x70] ss:$8 sps:$4 sm:$0xff]   ;;  %v2408_v1 = vld [vmem:[%s3229_s8 + $0x2c] sm:$0x1] }
  0x4c   : > { %1126 = vrot.lane.b32.xlu1 %v2805_v5, %s2994_s23  ;;  %744 = vrot.lane.b32.xlu0 %v2806_v8, %s2994_s23  ;;  %v516_v5 = vld [vmem:[%s3229_s8 + $0x2c] sm:$0x1]  ;;  %v547_v8 = vunpack.c.h.bf16 %v513_v3  ;;  %v2857_v3 = vld [vmem:[%s3229_s8 + $0x58] ss:$8 sps:$4 sm:$0xff]   ;;  %v636_v7 = vrot.slane %v560_v2, 1  ;;  %1065 = vst.msk [vmem:[#allocation2 + $0x108] sm:$0xff] %vm415_vm1, %v2865_v43 }
  0x4d   : > { %v548_v9 = vunpack.c.l.bf16 %v516_v5  ;;  %v616_v18 = vsel %vm601_vm0, %v614_v11, %v615_v12  ;;  %421 = vst.msk [vmem:[#allocation2 + $0xc8] sm:$0xff] %vm415_vm1, %v2857_v3  ;;  %v529_v11 = vld [vmem:[%s3229_s8 + $0x68] ss:$8 sps:$4 sm:$0xff]   ;;  %v530_v12 = vld [vmem:[%s3229_s8 + $0x6c] sm:$0x1] }
  0x4e   : > { %v617_v13 = vrot.slane %v547_v8, 1  ;;  %2639 = vmatpush3.bf16.msra.mxu1 %v2844_v17  ;;  %v2858_v8 = vld [vmem:[%s3229_s8 + $0x50] ss:$8 sps:$4 sm:$0xff]   ;;  %v637_v14 = vsel %vm601_vm0, %v635_v6, %v636_v7  ;;  %v561_v15 = vunpack.c.l.bf16 %v529_v11  ;;  %v563_v17 = vunpack.c.h.bf16 %v529_v11  ;;  %v2410_v11 = vld [vmem:[%s3229_s8 + $0x34] sm:$0x1] }
  0x4f   : > { %v618_v16 = vrot.slane %v548_v9, 1  ;;  %2640 = vmatprep.subr.bf16.mxu1 %v2847_v23  ;;  %1063 = vst.msk [vmem:[#allocation2 + $0xb8] sm:$0xff] %vm415_vm1, %v2858_v8  ;;  %v2869_v49 = vld [vmem:[%s3319_s9 + $0x78] ss:$8 sps:$4 sm:$0xff]   ;;  %v1191_v25 = vunpack.c.l.bf16 %v2410_v11  ;;  %v2414_v33 = vld [vmem:[%s3229_s8 + $0x44] sm:$0x1] }
  0x50   : > { %996 = vrot.lane.b32.xlu1 %v975_v37, %s2994_s23  ;;  %486 = vrot.lane.b32.xlu0 %v2807_v32, %s2994_s23  ;;  %v2849_v32 = vld [vmem:[%s3319_s9 + $0x10] ss:$8 sps:$4 sm:$0xff]   ;;  %v624_v37 = vrot.slane %v552_v31, 1  ;;  %v641_v23 = vrot.slane %v563_v17, 1  ;;  %v536_v31 = vld [vmem:[%s3229_s8 + $0x84] sm:$0x1] }
  0x51   : > { %v619_v19 = vsel %vm601_vm0, %v617_v13, %v618_v16  ;;  %803 = vst.msk [vmem:[#allocation2 + $0x38] sm:$0xff] %vm415_vm1, %v2849_v32  ;;  %v532_v13 = vld [vmem:[%s3229_s8 + $0x74] sm:$0x1]  ;;  %v562_v16 = vunpack.c.l.bf16 %v530_v12  ;;  %v565_v32 = vunpack.c.l.bf16 %v533_v28  ;;  %v568_v36 = vunpack.c.l.bf16 %v536_v31  ;;  %809 = vst.msk [vmem:[#allocation2 + $0x128] sm:$0xff] %vm415_vm1, %v2869_v49  ;;  %v2412_v28 = vld [vmem:[%s3229_s8 + $0x3c] sm:$0x1] }
  0x52   : > { %v668_v21 = vpack.c.bf16 %v619_v19, %v616_v18  ;;  %2641 = vmatpush3.bf16.msra.mxu1 %v2848_v24  ;;  %v625_v42 = vsel %vm601_vm0, %v623_v34, %v624_v37  ;;  %v2859_v18 = vld [vmem:[%s3319_s9 + $0x48] ss:$8 sps:$4 sm:$0xff]   ;;  %v564_v20 = vunpack.c.l.bf16 %v532_v13  ;;  %v2863_v37 = vld [vmem:[%s3319_s9 + $0x58] ss:$8 sps:$4 sm:$0xff]   ;;  %v2416_v17 = vld [vmem:[%s3229_s8 + $0x54] sm:$0x1] }
  0x53   : > { %2726 = vmatprep.subr.bf16.mxu1 %v3326_v10  ;;  %v669_v46 = vpack.c.bf16 %v625_v42, %v622_v41  ;;  %v639_v22 = vrot.slane %v562_v16, 1  ;;  %806 = vst.msk [vmem:[#allocation2 + $0xb0] sm:$0xff] %vm415_vm1, %v2859_v18  ;;  %v644_v38 = vrot.slane %v565_v32, 1  ;;  %v645_v41 = vrot.slane %v566_v35, 1  ;;  %807 = vst.msk [vmem:[#allocation2 + $0xd8] sm:$0xff] %vm415_vm1, %v2863_v37 }
  0x54   : > { %998 = vrot.lane.b32.xlu1 %v976_v53, %s2994_s23  ;;  %1128 = vrot.lane.b32.xlu0 %v2808_v50, %s2994_s23  ;;  %676 = vst.msk [vmem:[#allocation2 + $0x58] sm:$0xff] %vm415_vm1, %v668_v21  ;;  %v626_v50 = vrot.slane %v553_v44, 1  ;;  %v630_v53 = vrot.slane %v556_v48, 1  ;;  %v638_v21 = vrot.slane %v561_v15, 1  ;;  %v642_v24 = vrot.slane %v564_v20, 1 }
  0x55   : > { %677 = vst.msk [vmem:[#allocation2 + $0x80] sm:$0xff] %vm415_vm1, %v669_v46  ;;  %v648_v42 = vrot.slane %v568_v36, 1  ;;  %v646_v44 = vsel %vm601_vm0, %v644_v38, %v645_v41  ;;  %v2866_v46 = vld [vmem:[%s3319_s9 + $0x68] ss:$8 sps:$4 sm:$0xff]   ;;  %v1189_v15 = vunpack.c.l.bf16 %v2408_v1  ;;  %v1197_v31 = vunpack.c.l.bf16 %v2416_v17  ;;  %v2430_v17 = vld [vmem:[%s3229_s8 + $0x8c] sm:$0x1]  ;;  %s3575_s9 = scalar_lea.hbm %s3705_s5, %s2514_s18 }
  0x56   : > { %v628_v55 = vsel %vm601_vm0, %v626_v50, %v627_v51  ;;  %v631_v57 = vsel %vm601_vm0, %v629_v52, %v630_v53  ;;  %v640_v26 = vsel %vm601_vm0, %v638_v21, %v639_v22  ;;  %v643_v29 = vsel %vm601_vm0, %v641_v23, %v642_v24  ;;  %v2868_v48 = vld [vmem:[%s3229_s8 + $0x80] ss:$8 sps:$4 sm:$0xff]   ;;  %808 = vst.msk [vmem:[#allocation2 + $0x100] sm:$0xff] %vm415_vm1, %v2866_v46  ;;  %v2400_v51 = vld [vmem:[%s3229_s8 + $0xc] sm:$0x1] }
  0x57   : > { %v672_v34 = vpack.c.bf16 %v643_v29, %v640_v26  ;;  %v649_v45 = vsel %vm601_vm0, %v647_v39, %v648_v42  ;;  %1066 = vst.msk [vmem:[#allocation2 + $0x130] sm:$0xff] %vm415_vm1, %v2868_v48  ;;  %v2399_v50 = vld [vmem:[%s3229_s8 + $0x8] ss:$8 sps:$4 sm:$0xff]   ;;  %v2402_v52 = vld [vmem:[%s3229_s8 + $0x14] sm:$0x1]  ;;  %v1181_v54 = vunpack.c.l.bf16 %v2400_v51  ;;  %v1190_v21 = vunpack.c.h.bf16 %v2407_v0 }
  0x58   : > { %1000 = vrot.lane.b32.xlu1 %v977_v61, %s2994_s23  ;;  %1130 = vrot.lane.b32.xlu0 %v2809_v59, %s2994_s23  ;;  %v526_v59 = vld [vmem:[%s3229_s8 + $0x5c] sm:$0x1]  ;;  %v670_v61 = vpack.c.bf16 %v631_v57, %v628_v55  ;;  %v673_v47 = vpack.c.bf16 %v649_v45, %v646_v44  ;;  %v1180_v53 = vunpack.c.l.bf16 %v2399_v50  ;;  %v1182_v55 = vunpack.c.h.bf16 %v2399_v50  ;;  %v2403_v57 = vld [vmem:[%s3229_s8 + $0x18] ss:$8 sps:$4 sm:$0xff]  }
  0x59   : > { %v558_v63 = vunpack.c.l.bf16 %v526_v59  ;;  %680 = vst.msk [vmem:[#allocation2 + $0xf8] sm:$0xff] %vm415_vm1, %v672_v34  ;;  %v1183_v56 = vunpack.c.l.bf16 %v2402_v52  ;;  %v2406_v59 = vld [vmem:[%s3229_s8 + $0x24] sm:$0x1]  ;;  %v1184_v60 = vunpack.c.l.bf16 %v2403_v57  ;;  %v1186_v62 = vunpack.c.h.bf16 %v2403_v57  ;;  %v2415_v16 = vld [vmem:[%s3229_s8 + $0x50] ss:$8 sps:$4 sm:$0xff]  }
  0x5a   : > { %678 = vst.msk [vmem:[#allocation2 + $0xa8] sm:$0xff] %vm415_vm1, %v670_v61  ;;  %681 = vst.msk [vmem:[#allocation2 + $0x120] sm:$0xff] %vm415_vm1, %v673_v47  ;;  %v1185_v61 = vunpack.c.l.bf16 %v2404_v58  ;;  %v1244_v2 = vrot.slane %v1180_v53, 1  ;;  %v1245_v3 = vrot.slane %v1181_v54, 1  ;;  %v2418_v22 = vld [vmem:[%s3229_s8 + $0x5c] sm:$0x1]  ;;  %v1196_v30 = vunpack.c.l.bf16 %v2415_v16 }
  0x5b   : > { %v633_v5 = vrot.slane %v558_v63, 1  ;;  %v1187_v63 = vunpack.c.l.bf16 %v2406_v59  ;;  %v1250_v6 = vrot.slane %v1184_v60, 1  ;;  %v1253_v8 = vrot.slane %v1186_v62, 1  ;;  %v2411_v23 = vld [vmem:[%s3229_s8 + $0x38] ss:$8 sps:$4 sm:$0xff]  }
  0x5c   : > { %v1251_v7 = vrot.slane %v1185_v61, 1  ;;  %v1246_v12 = vsel %vm601_vm0, %v1244_v2, %v1245_v3  ;;  %v1257_v27 = vrot.slane %v1189_v15, 1  ;;  %v1259_v29 = vrot.slane %v1190_v21, 1  ;;  %v2419_v42 = vld [vmem:[%s3229_s8 + $0x60] ss:$8 sps:$4 sm:$0xff]  }
  0x5d   : > { %v634_v9 = vsel %vm601_vm0, %v632_v4, %v633_v5  ;;  %v1247_v4 = vrot.slane %v1182_v55, 1  ;;  %v1248_v5 = vrot.slane %v1183_v56, 1  ;;  %v1198_v32 = vunpack.c.h.bf16 %v2415_v16  ;;  %v2420_v47 = vld [vmem:[%s3229_s8 + $0x64] sm:$0x1]  ;;  %v2422_v52 = vld [vmem:[%s3229_s8 + $0x6c] sm:$0x1] }
  0x5e   : > { %v671_v19 = vpack.c.bf16 %v637_v14, %v634_v9  ;;  %v1254_v9 = vrot.slane %v1187_v63, 1  ;;  %v1188_v14 = vunpack.c.l.bf16 %v2407_v0  ;;  %v1260_v35 = vrot.slane %v1191_v25, 1  ;;  %v2423_v53 = vld [vmem:[%s3229_s8 + $0x70] ss:$8 sps:$4 sm:$0xff]   ;;  %v2424_v58 = vld [vmem:[%s3229_s8 + $0x74] sm:$0x1] }
  0x5f   : > { %v1249_v13 = vsel %vm601_vm0, %v1247_v4, %v1248_v5  ;;  %v1199_v36 = vunpack.c.l.bf16 %v2418_v22  ;;  %v1192_v37 = vunpack.c.l.bf16 %v2411_v23  ;;  %v1268_v38 = vrot.slane %v1196_v30, 1  ;;  %v2426_v63 = vld [vmem:[%s3229_s8 + $0x7c] sm:$0x1]  ;;  %v2427_v5 = vld [vmem:[%s3229_s8 + $0x80] ss:$8 sps:$4 sm:$0xff]  }
  0x60   : > { %679 = vst.msk [vmem:[#allocation2 + $0xd0] sm:$0xff] %vm415_vm1, %v671_v19  ;;  %v1308_v18 = vpack.c.bf16 %v1249_v13, %v1246_v12  ;;  %v1252_v19 = vsel %vm601_vm0, %v1250_v6, %v1251_v7  ;;  %v1255_v20 = vsel %vm601_vm0, %v1253_v8, %v1254_v9  ;;  %v1256_v26 = vrot.slane %v1188_v14, 1  ;;  %v2428_v6 = vld [vmem:[%s3229_s8 + $0x84] sm:$0x1] }
  0x61   : > { %v1309_v24 = vpack.c.bf16 %v1255_v20, %v1252_v19  ;;  %v1269_v39 = vrot.slane %v1197_v31, 1  ;;  %v1271_v40 = vrot.slane %v1198_v32, 1  ;;  %v1193_v41 = vunpack.c.l.bf16 %v2412_v28 }
  0x62   : > { %1316 = vst.msk [vmem:[#allocation2 + $0x20] sm:$0xff] %vm415_vm1, %v1308_v18  ;;  %v1258_v34 = vsel %vm601_vm0, %v1256_v26, %v1257_v27  ;;  %v1261_v43 = vsel %vm601_vm0, %v1259_v29, %v1260_v35  ;;  %v1272_v44 = vrot.slane %v1199_v36, 1  ;;  %v1194_v45 = vunpack.c.h.bf16 %v2411_v23 }
  0x63   : > { %1317 = vst.msk [vmem:[#allocation2 + $0x48] sm:$0xff] %vm415_vm1, %v1309_v24  ;;  %v1195_v46 = vunpack.c.l.bf16 %v2414_v33  ;;  %v1310_v48 = vpack.c.bf16 %v1261_v43, %v1258_v34  ;;  %v1270_v49 = vsel %vm601_vm0, %v1268_v38, %v1269_v39  ;;  %v1262_v50 = vrot.slane %v1192_v37, 1 }
  0x64   : > { %v1263_v51 = vrot.slane %v1193_v41, 1  ;;  %v1273_v54 = vsel %vm601_vm0, %v1271_v40, %v1272_v44  ;;  %v1265_v55 = vrot.slane %v1194_v45, 1  ;;  %v1200_v57 = vunpack.c.l.bf16 %v2419_v42  ;;  %v2853_v45 = vld [vmem:[%s3704_s4 + $0x108] sm:$0xff]  }
  0x65   : > { %v1266_v56 = vrot.slane %v1195_v46, 1  ;;  %1318 = vst.msk [vmem:[#allocation2 + $0x70] sm:$0xff] %vm415_vm1, %v1310_v48  ;;  %v1312_v59 = vpack.c.bf16 %v1273_v54, %v1270_v49  ;;  %v1201_v61 = vunpack.c.l.bf16 %v2420_v47  ;;  %v1202_v62 = vunpack.c.h.bf16 %v2419_v42 }
  0x66   : > { %v1264_v60 = vsel %vm601_vm0, %v1262_v50, %v1263_v51  ;;  %v1203_v2 = vunpack.c.l.bf16 %v2422_v52  ;;  %v1274_v3 = vrot.slane %v1200_v57, 1  ;;  %v1204_v4 = vunpack.c.l.bf16 %v2423_v53  ;;  %v2860_v50 = vld [vmem:[%s3704_s4 + $0x110] sm:$0xff]   ;;  %v2867_v57 = vld [vmem:[%s3704_s4 + $0x118] sm:$0xff]  }
  0x67   : > { %v1267_v1 = vsel %vm601_vm0, %v1265_v55, %v1266_v56  ;;  %1320 = vst.msk [vmem:[#allocation2 + $0xc0] sm:$0xff] %vm415_vm1, %v1312_v59  ;;  %v1275_v9 = vrot.slane %v1201_v61, 1  ;;  %v1277_v11 = vrot.slane %v1202_v62, 1  ;;  %v1205_v12 = vunpack.c.l.bf16 %v2424_v58 }
  0x68   : > { %v1311_v8 = vpack.c.bf16 %v1267_v1, %v1264_v60  ;;  %v1278_v13 = vrot.slane %v1203_v2, 1  ;;  %v1206_v14 = vunpack.c.h.bf16 %v2423_v53  ;;  %v1207_v15 = vunpack.c.l.bf16 %v2426_v63 }
  0x69   : > { %v1280_v16 = vrot.slane %v1204_v4, 1  ;;  %v1276_v18 = vsel %vm601_vm0, %v1274_v3, %v1275_v9  ;;  %v1281_v19 = vrot.slane %v1205_v12, 1  ;;  %v1208_v20 = vunpack.c.l.bf16 %v2427_v5 }
  0x6a   : > { %1319 = vst.msk [vmem:[#allocation2 + $0x98] sm:$0xff] %vm415_vm1, %v1311_v8  ;;  %v1209_v21 = vunpack.c.l.bf16 %v2428_v6  ;;  %v1279_v23 = vsel %vm601_vm0, %v1277_v11, %v1278_v13  ;;  %v1283_v24 = vrot.slane %v1206_v14, 1  ;;  %v1284_v25 = vrot.slane %v1207_v15, 1 }
  0x6b   : > { %v1210_v26 = vunpack.c.h.bf16 %v2427_v5  ;;  %v1313_v28 = vpack.c.bf16 %v1279_v23, %v1276_v18  ;;  %v1282_v29 = vsel %vm601_vm0, %v1280_v16, %v1281_v19  ;;  %v1211_v30 = vunpack.c.l.bf16 %v2430_v17 }
  0x6c   : > { %v1286_v31 = vrot.slane %v1208_v20, 1  ;;  %v1285_v32 = vsel %vm601_vm0, %v1283_v24, %v1284_v25  ;;  %v1287_v33 = vrot.slane %v1209_v21, 1 }
  0x6d   : > { %v1289_v34 = vrot.slane %v1210_v26, 1  ;;  %1321 = vst.msk [vmem:[#allocation2 + $0xe8] sm:$0xff] %vm415_vm1, %v1313_v28  ;;  %v1314_v35 = vpack.c.bf16 %v1285_v32, %v1282_v29  ;;  %v1290_v36 = vrot.slane %v1211_v30, 1 }
  0x6e   : > { %v1288_v38 = vsel %vm601_vm0, %v1286_v31, %v1287_v33 }
  0x6f   : > { %1322 = vst.msk [vmem:[#allocation2 + $0x110] sm:$0xff] %vm415_vm1, %v1314_v35  ;;  %v1291_v41 = vsel %vm601_vm0, %v1289_v34, %v1290_v36 }
  0x70   : > { %v1315_v42 = vpack.c.bf16 %v1291_v41, %v1288_v38  ;;  %v1348_v41 = vld [vmem:[#allocation2 + $0xc0] sm:$0xff] }
  0x72   : > { %1323 = vst.msk [vmem:[#allocation2 + $0x138] sm:$0xff] %vm415_vm1, %v1315_v42  ;;  %v1338_v42 = vld [vmem:[#allocation2 + $0x70] sm:$0xff] }
  0x8e   : > { %v733_v0 = vpop.permute.xlu1 %732  ;;  %v731_v7 = vpop.permute.xlu0 %730 }
  0x8f   : > { %755 = vst.msk [vmem:[#allocation2 + $0x30] sm:$0xff] %vm496_vm2, %v733_v0  ;;  %754 = vst.msk [vmem:[#allocation2 + $0x8] sm:$0xff] %vm496_vm2, %v731_v7 }
  0x92   : > { %v475_v22 = vpop.permute.xlu1 %474  ;;  %v473_v27 = vpop.permute.xlu0 %472 }
  0x93   : > { %498 = vst.msk [vmem:[#allocation2 + $0x28] sm:$0xff] %vm496_vm2, %v475_v22  ;;  %497 = vst.msk [vmem:[#allocation2] sm:$0xff] %vm496_vm2, %v473_v27 }
  0x96   : > { %v1117_v37 = vpop.permute.xlu1 %1116  ;;  %v1325_v39 = vld [vmem:[#allocation2 + $0x8] sm:$0xff]  ;;  %v735_v40 = vpop.permute.xlu0 %734  ;;  %v1330_v44 = vld [vmem:[#allocation2 + $0x30] sm:$0xff] }
  0x97   : > { %1140 = vst.msk [vmem:[#allocation2 + $0x18] sm:$0xff] %vm496_vm2, %v1117_v37  ;;  %1708 = vmatprep.mubr.bf16.mxu0 %v1325_v39  ;;  %756 = vst.msk [vmem:[#allocation2 + $0x58] sm:$0xff] %vm496_vm2, %v735_v40  ;;  %v1328_v37 = vld [vmem:[#allocation2 + $0x20] sm:$0xff]  ;;  %v1333_v40 = vld [vmem:[#allocation2 + $0x48] sm:$0xff] }
  0x9a   : > { %v987_v43 = vpop.permute.xlu1 %986  ;;  %v1324_v46 = vld [vmem:[#allocation2] sm:$0xff]  ;;  %v477_v47 = vpop.permute.xlu0 %476  ;;  %v1329_v52 = vld [vmem:[#allocation2 + $0x28] sm:$0xff] }
  0x9b   : > { %1010 = vst.msk [vmem:[#allocation2 + $0x10] sm:$0xff] %vm496_vm2, %v987_v43  ;;  %1709 = vmatmul.mubr.bf16.vlgmr.msra.gmra.mrb[0].mxu0 %v1324_v46  ;;  %499 = vst.msk [vmem:[#allocation2 + $0x50] sm:$0xff] %vm496_vm2, %v477_v47  ;;  %v1353_v43 = vld [vmem:[#allocation2 + $0xe8] sm:$0xff]  ;;  %v1363_v46 = vld [vmem:[#allocation2 + $0x138] sm:$0xff] }
  0x9c   : > { %2703 = vmatpush3.bf16.msra.mxu0 %v3326_v10  ;;  %1716 = vmatprep.mubr.bf16.mxu0 %v1330_v44  ;;  %v1343_v44 = vld [vmem:[#allocation2 + $0x98] sm:$0xff] }
  0x9d   : > { %2704 = vmatprep.subr.bf16.mxu0 %v2853_v45 }
  0x9e   : > { %v1119_v48 = vpop.permute.xlu1 %1118  ;;  %v1327_v49 = vld [vmem:[#allocation2 + $0x18] sm:$0xff]  ;;  %v737_v51 = vpop.permute.xlu0 %736 }
  0x9f   : > { %1141 = vst.msk [vmem:[#allocation2 + $0x40] sm:$0xff] %vm496_vm2, %v1119_v48  ;;  %1805 = vmatprep.mubr.bf16.mxu1 %v1327_v49  ;;  %757 = vst.msk [vmem:[#allocation2 + $0x80] sm:$0xff] %vm496_vm2, %v737_v51  ;;  %v1335_v55 = vld [vmem:[#allocation2 + $0x58] sm:$0xff] }
  0xa0   : > { %2705 = vmatpush3.bf16.msra.mxu0 %v2853_v45 }
  0xa1   : > { %2706 = vmatprep.subr.bf16.mxu0 %v2860_v50 }
  0xa2   : > { %v989_v53 = vpop.permute.xlu1 %988  ;;  %v1326_v54 = vld [vmem:[#allocation2 + $0x10] sm:$0xff]  ;;  %v479_v56 = vpop.permute.xlu0 %478 }
  0xa3   : > { %1011 = vst.msk [vmem:[#allocation2 + $0x38] sm:$0xff] %vm496_vm2, %v989_v53  ;;  %1806 = vmatmul.mubr.bf16.vlgmr.msra.gmra.mrb[0].mxu1 %v1326_v54  ;;  %1717 = vmatmul.mubr.bf16.gmra.mrb[4].mxu0 %v1329_v52  ;;  %500 = vst.msk [vmem:[#allocation2 + $0x78] sm:$0xff] %vm496_vm2, %v479_v56  ;;  %v1334_v61 = vld [vmem:[#allocation2 + $0x50] sm:$0xff] }
  0xa4   : > { %2730 = vmatpush3.bf16.msra.mxu1 %v3326_v10  ;;  %1724 = vmatprep.mubr.bf16.mxu0 %v1335_v55 }
  0xa5   : > { %2727 = vmatprep.subr.bf16.mxu1 %v2853_v45  ;;  %2707 = vmatpush3.bf16.msra.mxu0 %v2860_v50 }
  0xa6   : > { %v1121_v58 = vpop.permute.xlu1 %1120  ;;  %v1332_v59 = vld [vmem:[#allocation2 + $0x40] sm:$0xff]  ;;  %v739_v60 = vpop.permute.xlu0 %738  ;;  %2708 = vmatprep.subr.bf16.mxu0 %v2867_v57 }
  0xa7   : > { %1142 = vst.msk [vmem:[#allocation2 + $0x68] sm:$0xff] %vm496_vm2, %v1121_v58  ;;  %1813 = vmatprep.mubr.bf16.mxu1 %v1332_v59  ;;  %758 = vst.msk [vmem:[#allocation2 + $0xa8] sm:$0xff] %vm496_vm2, %v739_v60  ;;  %v1340_v0 = vld [vmem:[#allocation2 + $0x80] sm:$0xff] }
  0xa8   : > { %2731 = vmatpush3.bf16.msra.mxu1 %v2853_v45  ;;  %v1358_v45 = vld [vmem:[#allocation2 + $0x110] sm:$0xff] }
  0xa9   : > { %2728 = vmatprep.subr.bf16.mxu1 %v2860_v50  ;;  %2709 = vmatpush3.bf16.msra.mxu0 %v2867_v57 }
  0xaa   : > { %v991_v62 = vpop.permute.xlu1 %990  ;;  %v1331_v63 = vld [vmem:[#allocation2 + $0x38] sm:$0xff]  ;;  %v481_v10 = vpop.permute.xlu0 %480 }
  0xab   : > { %1012 = vst.msk [vmem:[#allocation2 + $0x60] sm:$0xff] %vm496_vm2, %v991_v62  ;;  %1814 = vmatmul.mubr.bf16.gmra.mrb[4].mxu1 %v1331_v63  ;;  %1725 = vmatmul.mubr.bf16.gmra.mrb[8].mxu0 %v1334_v61  ;;  %501 = vst.msk [vmem:[#allocation2 + $0xa0] sm:$0xff] %vm496_vm2, %v481_v10  ;;  %v1339_v4 = vld [vmem:[#allocation2 + $0x78] sm:$0xff] }
  0xac   : > { %2732 = vmatpush3.bf16.msra.mxu1 %v2860_v50  ;;  %1732 = vmatprep.mubr.bf16.mxu0 %v1340_v0 }
  0xad   : > { %2729 = vmatprep.subr.bf16.mxu1 %v2867_v57 }
  0xae   : > { %v1123_v1 = vpop.permute.xlu1 %1122  ;;  %v1337_v2 = vld [vmem:[#allocation2 + $0x68] sm:$0xff]  ;;  %v741_v3 = vpop.permute.xlu0 %740 }
  0xaf   : > { %1143 = vst.msk [vmem:[#allocation2 + $0x90] sm:$0xff] %vm496_vm2, %v1123_v1  ;;  %1821 = vmatprep.mubr.bf16.mxu1 %v1337_v2  ;;  %759 = vst.msk [vmem:[#allocation2 + $0xd0] sm:$0xff] %vm496_vm2, %v741_v3  ;;  %v1345_v7 = vld [vmem:[#allocation2 + $0xa8] sm:$0xff] }
  0xb0   : > { %2733 = vmatpush3.bf16.msra.mxu1 %v2867_v57 }
  0xb2   : > { %v993_v5 = vpop.permute.xlu1 %992  ;;  %v1336_v6 = vld [vmem:[#allocation2 + $0x60] sm:$0xff]  ;;  %v483_v8 = vpop.permute.xlu0 %482 }
  0xb3   : > { %1013 = vst.msk [vmem:[#allocation2 + $0x88] sm:$0xff] %vm496_vm2, %v993_v5  ;;  %1822 = vmatmul.mubr.bf16.gmra.mrb[8].mxu1 %v1336_v6  ;;  %1733 = vmatmul.mubr.bf16.gmra.mrb[12].mxu0 %v1339_v4  ;;  %502 = vst.msk [vmem:[#allocation2 + $0xc8] sm:$0xff] %vm496_vm2, %v483_v8  ;;  %v1344_v13 = vld [vmem:[#allocation2 + $0xa0] sm:$0xff] }
  0xb4   : > { %1740 = vmatprep.mubr.bf16.mxu0 %v1345_v7 }
  0xb6   : > { %v1125_v9 = vpop.permute.xlu1 %1124  ;;  %v1342_v11 = vld [vmem:[#allocation2 + $0x90] sm:$0xff]  ;;  %v743_v12 = vpop.permute.xlu0 %742 }
  0xb7   : > { %1144 = vst.msk [vmem:[#allocation2 + $0xb8] sm:$0xff] %vm496_vm2, %v1125_v9  ;;  %1829 = vmatprep.mubr.bf16.mxu1 %v1342_v11  ;;  %760 = vst.msk [vmem:[#allocation2 + $0xf8] sm:$0xff] %vm496_vm2, %v743_v12  ;;  %v1350_v16 = vld [vmem:[#allocation2 + $0xd0] sm:$0xff] }
  0xba   : > { %v995_v14 = vpop.permute.xlu1 %994  ;;  %v1341_v15 = vld [vmem:[#allocation2 + $0x88] sm:$0xff]  ;;  %v485_v17 = vpop.permute.xlu0 %484 }
  0xbb   : > { %1014 = vst.msk [vmem:[#allocation2 + $0xb0] sm:$0xff] %vm496_vm2, %v995_v14  ;;  %1830 = vmatmul.mubr.bf16.gmra.mrb[12].mxu1 %v1341_v15  ;;  %1741 = vmatmul.mubr.bf16.gmra.mrb[16].mxu0 %v1344_v13  ;;  %503 = vst.msk [vmem:[#allocation2 + $0xf0] sm:$0xff] %vm496_vm2, %v485_v17  ;;  %v1349_v21 = vld [vmem:[#allocation2 + $0xc8] sm:$0xff] }
  0xbc   : > { %1748 = vmatprep.mubr.bf16.mxu0 %v1350_v16 }
  0xbe   : > { %v1127_v18 = vpop.permute.xlu1 %1126  ;;  %v1347_v19 = vld [vmem:[#allocation2 + $0xb8] sm:$0xff]  ;;  %v745_v20 = vpop.permute.xlu0 %744 }
  0xbf   : > { %1145 = vst.msk [vmem:[#allocation2 + $0xe0] sm:$0xff] %vm496_vm2, %v1127_v18  ;;  %1837 = vmatprep.mubr.bf16.mxu1 %v1347_v19  ;;  %761 = vst.msk [vmem:[#allocation2 + $0x120] sm:$0xff] %vm496_vm2, %v745_v20  ;;  %v1355_v24 = vld [vmem:[#allocation2 + $0xf8] sm:$0xff] }
  0xc2   : > { %v997_v22 = vpop.permute.xlu1 %996  ;;  %v1346_v23 = vld [vmem:[#allocation2 + $0xb0] sm:$0xff]  ;;  %v487_v25 = vpop.permute.xlu0 %486 }
  0xc3   : > { %1015 = vst.msk [vmem:[#allocation2 + $0xd8] sm:$0xff] %vm496_vm2, %v997_v22  ;;  %1838 = vmatmul.mubr.bf16.gmra.mrb[16].mxu1 %v1346_v23  ;;  %1749 = vmatmul.mubr.bf16.gmra.mrb[20].mxu0 %v1349_v21  ;;  %504 = vst.msk [vmem:[#allocation2 + $0x118] sm:$0xff] %vm496_vm2, %v487_v25  ;;  %v1354_v29 = vld [vmem:[#allocation2 + $0xf0] sm:$0xff] }
  0xc4   : > { %1756 = vmatprep.mubr.bf16.mxu0 %v1355_v24 }
  0xc6   : > { %v999_v26 = vpop.permute.xlu1 %998  ;;  %v1352_v27 = vld [vmem:[#allocation2 + $0xe0] sm:$0xff]  ;;  %v1129_v28 = vpop.permute.xlu0 %1128 }
  0xc7   : > { %1016 = vst.msk [vmem:[#allocation2 + $0x100] sm:$0xff] %vm496_vm2, %v999_v26  ;;  %1845 = vmatprep.mubr.bf16.mxu1 %v1352_v27  ;;  %1146 = vst.msk [vmem:[#allocation2 + $0x108] sm:$0xff] %vm496_vm2, %v1129_v28  ;;  %v1360_v31 = vld [vmem:[#allocation2 + $0x120] sm:$0xff] }
  0xca   : > { %v1351_v30 = vld [vmem:[#allocation2 + $0xd8] sm:$0xff]  ;;  %v1001_v32 = vpop.permute.xlu1 %1000  ;;  %v1131_v33 = vpop.permute.xlu0 %1130 }
  0xcb   : > { %1846 = vmatmul.mubr.bf16.gmra.mrb[20].mxu1 %v1351_v30  ;;  %1017 = vst.msk [vmem:[#allocation2 + $0x128] sm:$0xff] %vm496_vm2, %v1001_v32  ;;  %1757 = vmatmul.mubr.bf16.gmra.mrb[24].mxu0 %v1354_v29  ;;  %1147 = vst.msk [vmem:[#allocation2 + $0x130] sm:$0xff] %vm496_vm2, %v1131_v33  ;;  %v1359_v36 = vld [vmem:[#allocation2 + $0x118] sm:$0xff] }
  0xcc   : > { %1764 = vmatprep.mubr.bf16.mxu0 %v1360_v31 }
  0xce   : > { %v1357_v34 = vld [vmem:[#allocation2 + $0x108] sm:$0xff]  ;;  %v1356_v35 = vld [vmem:[#allocation2 + $0x100] sm:$0xff] }
  0xcf   : > { %1853 = vmatprep.mubr.bf16.mxu1 %v1357_v34 }
  0xd2   : > { %v1362_v38 = vld [vmem:[#allocation2 + $0x130] sm:$0xff]  ;;  %v1361_v39 = vld [vmem:[#allocation2 + $0x128] sm:$0xff] }
  0xd3   : > { %1854 = vmatmul.mubr.bf16.gmra.mrb[24].mxu1 %v1356_v35  ;;  %1765 = vmatmul.mubr.bf16.gmra.mrb[28].mxu0 %v1359_v36 }
  0xd4   : > { %1861 = vmatprep.mubr.bf16.mxu1 %v1362_v38  ;;  %2710 = vmatprep.mubr.msk.bf16.mxu0 %vm415_vm1, %v1328_v37 }
  0xdb   : > { %1862 = vmatmul.mubr.bf16.gmra.mrb[28].mxu1 %v1361_v39  ;;  %2711 = vmatmul.mubr.msk.bf16.vlgmr.msra.gmra.mrb[32].mxu0 %vm415_vm1, %v1333_v40 }
  0xdc   : > { %2718 = vmatprep.mubr.msk.bf16.mxu1 %vm415_vm1, %v1348_v41  ;;  %2714 = vmatprep.mubr.msk.bf16.mxu0 %vm415_vm1, %v1338_v42 }
  0xe3   : > { %2719 = vmatmul.mubr.msk.bf16.vlgmr.msra.gmra.mrb[32].mxu1 %vm415_vm1, %v1353_v43  ;;  %2715 = vmatmul.mubr.msk.bf16.gmra.mrb[36].mxu0 %vm415_vm1, %v1343_v44 }
  0xe4   : > { %2722 = vmatprep.mubr.msk.bf16.mxu1 %vm415_vm1, %v1358_v45 }
  0xeb   : > { %2723 = vmatmul.mubr.msk.bf16.gmra.mrb[36].mxu1 %vm415_vm1, %v1363_v46 }
 0x16e   : > { %v2578_v47 = vpop.f32.mrb[0].mxu0 }
 0x16f   : > { %v2579_v48 = vpop.f32.mrb[1].mxu0 }
 0x170   : > { %v2580_v49 = vadd.f32 %v2579_v48, %v2578_v47  ;;  %v2581_v50 = vpop.f32.mrb[2].mxu0 }
 0x171   : > { %v2582_v51 = vpop.f32.mrb[3].mxu0 }
 0x172   : > { %v2583_v52 = vadd.f32 %v2582_v51, %v2581_v50 }
 0x176   : > { %v2642_v53 = vpop.f32.mrb[0].mxu1  ;;  %v2584_v54 = vpop.f32.mrb[4].mxu0 }
 0x177   : > { %v2643_v55 = vpop.f32.mrb[1].mxu1  ;;  %v2585_v56 = vpop.f32.mrb[5].mxu0 }
 0x178   : > { %v2644_v57 = vadd.f32 %v2643_v55, %v2642_v53  ;;  %v2645_v58 = vpop.f32.mrb[2].mxu1  ;;  %v2586_v59 = vadd.f32 %v2585_v56, %v2584_v54  ;;  %v2587_v60 = vpop.f32.mrb[6].mxu0 }
 0x179   : > { %v2646_v61 = vpop.f32.mrb[3].mxu1  ;;  %v2588_v62 = vpop.f32.mrb[7].mxu0 }
 0x17a   : > { %v2647_v63 = vadd.f32 %v2646_v61, %v2645_v58  ;;  %v3516_v0 = vadd.f32 %v2644_v57, %v2580_v49  ;;  %v2589_v10 = vadd.f32 %v2588_v62, %v2587_v60 }
 0x17c   : > { %v3518_v1 = vadd.f32 %v2647_v63, %v2583_v52 }
 0x17e   : > { %v2648_v2 = vpop.f32.mrb[4].mxu1  ;;  %v2590_v3 = vpop.f32.mrb[8].mxu0 }
 0x17f   : > { %v2649_v4 = vpop.f32.mrb[5].mxu1  ;;  %v2591_v5 = vpop.f32.mrb[9].mxu0 }
 0x180   : > { %v2650_v6 = vadd.f32 %v2649_v4, %v2648_v2  ;;  %v2651_v7 = vpop.f32.mrb[6].mxu1  ;;  %v2592_v8 = vadd.f32 %v2591_v5, %v2590_v3  ;;  %v2593_v9 = vpop.f32.mrb[10].mxu0 }
 0x181   : > { %v2652_v11 = vpop.f32.mrb[7].mxu1  ;;  %v2594_v12 = vpop.f32.mrb[11].mxu0 }
 0x182   : > { %v2653_v13 = vadd.f32 %v2652_v11, %v2651_v7  ;;  %v3520_v14 = vadd.f32 %v2650_v6, %v2586_v59  ;;  %v2595_v15 = vadd.f32 %v2594_v12, %v2593_v9 }
 0x184   : > { %v3522_v16 = vadd.f32 %v2653_v13, %v2589_v10 }
 0x186   : > { %v2654_v17 = vpop.f32.mrb[8].mxu1  ;;  %v2596_v18 = vpop.f32.mrb[12].mxu0 }
 0x187   : > { %v2655_v19 = vpop.f32.mrb[9].mxu1  ;;  %v2597_v20 = vpop.f32.mrb[13].mxu0 }
 0x188   : > { %v2656_v21 = vadd.f32 %v2655_v19, %v2654_v17  ;;  %v2657_v22 = vpop.f32.mrb[10].mxu1  ;;  %v2598_v23 = vadd.f32 %v2597_v20, %v2596_v18  ;;  %v2599_v24 = vpop.f32.mrb[14].mxu0 }
 0x189   : > { %v2658_v25 = vpop.f32.mrb[11].mxu1  ;;  %v2600_v26 = vpop.f32.mrb[15].mxu0 }
 0x18a   : > { %v2659_v27 = vadd.f32 %v2658_v25, %v2657_v22  ;;  %v3524_v28 = vadd.f32 %v2656_v21, %v2592_v8  ;;  %v2601_v29 = vadd.f32 %v2600_v26, %v2599_v24 }
 0x18c   : > { %v3526_v30 = vadd.f32 %v2659_v27, %v2595_v15 }
 0x18e   : > { %v2660_v31 = vpop.f32.mrb[12].mxu1  ;;  %v2602_v32 = vpop.f32.mrb[16].mxu0 }
 0x18f   : > { %v2661_v33 = vpop.f32.mrb[13].mxu1  ;;  %v2603_v34 = vpop.f32.mrb[17].mxu0 }
 0x190   : > { %v2662_v35 = vadd.f32 %v2661_v33, %v2660_v31  ;;  %v2663_v36 = vpop.f32.mrb[14].mxu1  ;;  %v2604_v37 = vadd.f32 %v2603_v34, %v2602_v32  ;;  %v2605_v38 = vpop.f32.mrb[18].mxu0 }
 0x191   : > { %v2664_v39 = vpop.f32.mrb[15].mxu1  ;;  %v2606_v40 = vpop.f32.mrb[19].mxu0 }
 0x192   : > { %v2665_v41 = vadd.f32 %v2664_v39, %v2663_v36  ;;  %v3528_v42 = vadd.f32 %v2662_v35, %v2598_v23  ;;  %v2607_v43 = vadd.f32 %v2606_v40, %v2605_v38 }
 0x194   : > { %v3530_v44 = vadd.f32 %v2665_v41, %v2601_v29 }
 0x196   : > { %v2666_v45 = vpop.f32.mrb[16].mxu1  ;;  %v2608_v46 = vpop.f32.mrb[20].mxu0 }
 0x197   : > { %v2667_v47 = vpop.f32.mrb[17].mxu1  ;;  %v2609_v48 = vpop.f32.mrb[21].mxu0 }
 0x198   : > { %v2668_v49 = vadd.f32 %v2667_v47, %v2666_v45  ;;  %v2669_v50 = vpop.f32.mrb[18].mxu1  ;;  %v2610_v51 = vadd.f32 %v2609_v48, %v2608_v46  ;;  %v2611_v52 = vpop.f32.mrb[22].mxu0 }
 0x199   : > { %v2670_v53 = vpop.f32.mrb[19].mxu1  ;;  %v2612_v54 = vpop.f32.mrb[23].mxu0 }
 0x19a   : > { %v2671_v55 = vadd.f32 %v2670_v53, %v2669_v50  ;;  %v3532_v56 = vadd.f32 %v2668_v49, %v2604_v37  ;;  %v2613_v57 = vadd.f32 %v2612_v54, %v2611_v52 }
 0x19c   : > { %v3534_v58 = vadd.f32 %v2671_v55, %v2607_v43 }
 0x19e   : > { %v2672_v59 = vpop.f32.mrb[20].mxu1  ;;  %v2614_v60 = vpop.f32.mrb[24].mxu0 }
 0x19f   : > { %v2673_v61 = vpop.f32.mrb[21].mxu1  ;;  %v2615_v62 = vpop.f32.mrb[25].mxu0 }
 0x1a0   : > { %v2674_v63 = vadd.f32 %v2673_v61, %v2672_v59  ;;  %v2675_v10 = vpop.f32.mrb[22].mxu1  ;;  %v2616_v2 = vadd.f32 %v2615_v62, %v2614_v60  ;;  %v2617_v3 = vpop.f32.mrb[26].mxu0 }
 0x1a1   : > { %v2676_v4 = vpop.f32.mrb[23].mxu1  ;;  %v2618_v5 = vpop.f32.mrb[27].mxu0 }
 0x1a2   : > { %v2677_v6 = vadd.f32 %v2676_v4, %v2675_v10  ;;  %v1848_v7 = vadd.f32 %v2674_v63, %v2610_v51  ;;  %v2619_v8 = vadd.f32 %v2618_v5, %v2617_v3 }
 0x1a4   : > { %v1851_v9 = vadd.f32 %v2677_v6, %v2613_v57 }
 0x1a6   : > { %v2678_v11 = vpop.f32.mrb[24].mxu1  ;;  %v2620_v12 = vpop.f32.mrb[28].mxu0 }
 0x1a7   : > { %v2679_v13 = vpop.f32.mrb[25].mxu1  ;;  %v2621_v15 = vpop.f32.mrb[29].mxu0 }
 0x1a8   : > { %v2680_v17 = vadd.f32 %v2679_v13, %v2678_v11  ;;  %v2681_v18 = vpop.f32.mrb[26].mxu1  ;;  %v2622_v19 = vadd.f32 %v2621_v15, %v2620_v12  ;;  %v2623_v20 = vpop.f32.mrb[30].mxu0 }
 0x1a9   : > { %v2682_v21 = vpop.f32.mrb[27].mxu1  ;;  %v2624_v22 = vpop.f32.mrb[31].mxu0 }
 0x1aa   : > { %v2683_v23 = vadd.f32 %v2682_v21, %v2681_v18  ;;  %v3536_v24 = vadd.f32 %v2680_v17, %v2616_v2  ;;  %v2625_v25 = vadd.f32 %v2624_v22, %v2623_v20 }
 0x1ac   : > { %v3538_v26 = vadd.f32 %v2683_v23, %v2619_v8 }
 0x1ae   : > { %v2684_v27 = vpop.f32.mrb[28].mxu1  ;;  %v2712_v29 = vpop.f32.mrb[32].mxu0 }
 0x1af   : > { %v2685_v31 = vpop.f32.mrb[29].mxu1  ;;  %v1913_v32 = vadd.f32 %v2712_v29, %v3520_v14  ;;  %v1904_v34 = vpop.f32.mrb[33].mxu0 }
 0x1b0   : > { %v2686_v33 = vadd.f32 %v2685_v31, %v2684_v27  ;;  %v2687_v35 = vpop.f32.mrb[30].mxu1  ;;  %v1905_v36 = vadd.f32 %v1904_v34, %v3516_v0  ;;  %v2713_v37 = vpop.f32.mrb[34].mxu0 }
 0x1b1   : > { %v2688_v38 = vpop.f32.mrb[31].mxu1  ;;  %v1916_v39 = vadd.f32 %v2713_v37, %v3522_v16  ;;  %v1907_v41 = vpop.f32.mrb[35].mxu0  ;;  %v2071_v51 = vmul.f32 %v1913_v32, %v1913_v32 }
 0x1b2   : > { %v2689_v40 = vadd.f32 %v2688_v38, %v2687_v35  ;;  %v1864_v43 = vadd.f32 %v2686_v33, %v2622_v19  ;;  %v1908_v45 = vadd.f32 %v1907_v41, %v3518_v1  ;;  %v2069_v48 = vmul.f32 %v1905_v36, %v1905_v36 }
 0x1b3   : > { %v2523_v46 = vpack.c.bf16 %v1916_v39, %v1913_v32  ;;  %v2072_v61 = vmul.f32 %v1916_v39, %v1916_v39 }
 0x1b4   : > { %v1867_v47 = vadd.f32 %v2689_v40, %v2625_v25  ;;  %v2518_v49 = vpack.c.bf16 %v1908_v45, %v1905_v36  ;;  %v2047_v14 = vadd.f32 %v1908_v45, %v1905_v36  ;;  %v2070_v50 = vmul.f32 %v1908_v45, %v1908_v45 }
 0x1b5   : > { %2555 = vst [vmem:[%s3548_s13 + $0x8] sm:$0xff] %v2523_v46  }
 0x1b6   : > { %v2720_v0 = vpop.f32.mrb[32].mxu1  ;;  %2519 = vst [vmem:[%s3548_s13] sm:$0xff] %v2518_v49   ;;  %v2048_v16 = vadd.f32 %v2047_v14, %v1913_v32  ;;  %v2085_v52 = vadd.f32 %v2070_v50, %v2069_v48  ;;  %v2716_v53 = vpop.f32.mrb[36].mxu0 }
 0x1b7   : > { %v1945_v54 = vadd.f32 %v2720_v0, %v1848_v7  ;;  %v1936_v55 = vpop.f32.mrb[33].mxu1  ;;  %v1929_v1 = vadd.f32 %v2716_v53, %v3528_v42  ;;  %v1920_v57 = vpop.f32.mrb[37].mxu0 }
 0x1b8   : > { %v1937_v59 = vadd.f32 %v1936_v55, %v3532_v56  ;;  %v2721_v60 = vpop.f32.mrb[34].mxu1  ;;  %v2086_v62 = vadd.f32 %v2085_v52, %v2071_v51  ;;  %v1921_v63 = vadd.f32 %v1920_v57, %v3524_v28  ;;  %v2049_v10 = vadd.f32 %v2048_v16, %v1916_v39  ;;  %v2717_v2 = vpop.f32.mrb[38].mxu0 }
 0x1b9   : > { %v1939_v3 = vpop.f32.mrb[35].mxu1  ;;  %v1932_v4 = vadd.f32 %v2717_v2, %v3530_v44  ;;  %v3556_v5 = vadd.f32 %v2721_v60, %v1851_v9  ;;  %v1923_v6 = vpop.f32.mrb[39].mxu0  ;;  %v2075_v18 = vmul.f32 %v1929_v1, %v1929_v1  ;;  %v2079_v40 = vmul.f32 %v1945_v54, %v1945_v54 }
 0x1ba   : > { %v2050_v42 = vadd.f32 %v2049_v10, %v1921_v63  ;;  %v2073_v7 = vmul.f32 %v1921_v63, %v1921_v63  ;;  %v2087_v8 = vadd.f32 %v2086_v62, %v2072_v61  ;;  %v1924_v56 = vadd.f32 %v1923_v6, %v3526_v30 }
 0x1bb   : > { %v2533_v11 = vpack.c.bf16 %v1932_v4, %v1929_v1  ;;  %v2543_v12 = vpack.c.bf16 %v3556_v5, %v1945_v54  ;;  %v1940_v44 = vadd.f32 %v1939_v3, %v3534_v58  ;;  %v2076_v27 = vmul.f32 %v1932_v4, %v1932_v4 }
 0x1bc   : > { %v2088_v28 = vadd.f32 %v2087_v8, %v2073_v7  ;;  %v2528_v13 = vpack.c.bf16 %v1924_v56, %v1921_v63  ;;  %v2051_v15 = vadd.f32 %v2050_v42, %v1924_v56  ;;  %v2074_v17 = vmul.f32 %v1924_v56, %v1924_v56 }
 0x1bd   : > { %2557 = vst [vmem:[%s3548_s13 + $0x18] sm:$0xff] %v2533_v11   ;;  %2559 = vst [vmem:[%s3548_s13 + $0x28] sm:$0xff] %v2543_v12   ;;  %v2538_v22 = vpack.c.bf16 %v1940_v44, %v1937_v59  ;;  %v2077_v34 = vmul.f32 %v1937_v59, %v1937_v59  ;;  %v2078_v39 = vmul.f32 %v1940_v44, %v1940_v44 }
 0x1be   : > { %v2724_v9 = vpop.f32.mrb[36].mxu1  ;;  %2556 = vst [vmem:[%s3548_s13 + $0x10] sm:$0xff] %v2528_v13   ;;  %v2052_v19 = vadd.f32 %v2051_v15, %v1929_v1  ;;  %v2089_v20 = vadd.f32 %v2088_v28, %v2074_v17 }
 0x1bf   : > { %v3564_v30 = vadd.f32 %v2724_v9, %v1864_v43  ;;  %v1952_v21 = vpop.f32.mrb[37].mxu1  ;;  %2558 = vst [vmem:[%s3548_s13 + $0x20] sm:$0xff] %v2538_v22  }
 0x1c0   : > { %v1953_v23 = vadd.f32 %v1952_v21, %v3536_v24  ;;  %v2725_v25 = vpop.f32.mrb[38].mxu1  ;;  %v2090_v29 = vadd.f32 %v2089_v20, %v2075_v18  ;;  %v2053_v31 = vadd.f32 %v2052_v19, %v1932_v4 }
 0x1c1   : > { %v1964_v58 = vadd.f32 %v2725_v25, %v1867_v47  ;;  %v1955_v32 = vpop.f32.mrb[39].mxu1 }
 0x1c2   : > { %v1956_v33 = vadd.f32 %v1955_v32, %v3538_v26  ;;  %v2054_v35 = vadd.f32 %v2053_v31, %v1937_v59  ;;  %v2091_v36 = vadd.f32 %v2090_v29, %v2076_v27 }
 0x1c3   : > { %v2553_v24 = vpack.c.bf16 %v1964_v58, %v3564_v30 }
 0x1c4   : > { %v2548_v37 = vpack.c.bf16 %v1956_v33, %v1953_v23  ;;  %v2055_v38 = vadd.f32 %v2054_v35, %v1940_v44  ;;  %v2092_v26 = vadd.f32 %v2091_v36, %v2077_v34 }
 0x1c5   : > { %2561 = vst [vmem:[%s3548_s13 + $0x38] sm:$0xff] %v2553_v24  }
 0x1c6   : > { %2560 = vst [vmem:[%s3548_s13 + $0x30] sm:$0xff] %v2548_v37   ;;  %v2056_v41 = vadd.f32 %v2055_v38, %v1945_v54  ;;  %v2093_v43 = vadd.f32 %v2092_v26, %v2078_v39 }
 0x1c7   : > { %2883 = shalt.err (!%p2880_p3)
}
 0x1c8   : > { %s2884_s13 = scalar_lea.hbm %s3575_s9, 1024  ;;  %s2888_s8 = scalar_lea.hbm %s3705_s5, 2048 }
 0x1c9   : > { %p2885_p4 = scmp.ne.s32.totalorder %s3575_s9, %s2884_s13  ;;  %p2889_p9 = scmp.lt.u32.totalorder %s3575_s9, %s3705_s5 }
 0x1ca   : > { %p2890_p10 = scmp.lt.u32.totalorder %s2888_s8, %s2884_s13  ;;  %p2892_p12 = scmp.lt.u32.totalorder %s2884_s13, %s3575_s9 }
 0x1cb   : > { %p2886_p7 = pnand %p2885_p4, %p3079_p5 }
 0x1cc   : > { %p2891_p11 = por %p2890_p10, %p2889_p9 }
 0x1cd   : > { %p2887_p8 = pneg %p2886_p7 }
 0x1ce   : > { %p2893_p13 = por %p2892_p12, %p2891_p11 }
 0x1d0   : > { %p2894_p0 = pnand %p2893_p13, %p2887_p8 }
 0x1d2   : > { %2897 = shalt.err (!%p2894_p0)
}
 0x1d3   : > { %s2996_s21 = smov 4   ;;  %v2080_v45 = vmul.f32 %v3556_v5, %v3556_v5  ;;  %v2094_v46 = vadd.f32 %v2093_v43, %v2079_v40  ;;  %v2057_v47 = vadd.f32 %v2056_v41, %v3556_v5  ;;  %v2081_v49 = vmul.f32 %v1953_v23, %v1953_v23  ;;  %s3709_s17 = scalar_lea.vmem [#allocation7], %s3541_s16 }
 0x1d4   : > { %2735 = dma.vmem_to_hbm [thread:$0]  (%p3079_p5), %s3577_s19, 1024, %s3575_s9, %s2108_s14, %s2994_s23, %s2994_s23, %s2996_s21   ;;  %v2082_v51 = vmul.f32 %v1956_v33, %v1956_v33  ;;  %v2083_v16 = vmul.f32 %v3564_v30, %v3564_v30  ;;  %v2084_v54 = vmul.f32 %v1964_v58, %v1964_v58 }
 0x1d5   : > { %v2058_v48 = vadd.f32 %v2057_v47, %v1953_v23  ;;  %v2095_v14 = vadd.f32 %v2094_v46, %v2080_v45  ;;  %s2112_s23 = sand.u32 1, %s3060_s28   ;;  %s2494_s19 = sshll.u32 %s3060_s28, 4 }
 0x1d6   : > { %s338_s9 = scalar_lea.vmem [#allocation5], %s3541_s16  ;;  %s2158_s13 = sshll.u32 %s3709_s17, 4  ;;  %s3631_s13 = int_to_ptr.vmem [resolvable:$true] %s2158_s13 }
 0x1d7   : > { %v2096_v50 = vadd.f32 %v2095_v14, %v2081_v49  ;;  %v2059_v0 = vadd.f32 %v2058_v48, %v1956_v33  ;;  %s2145_s14 = sshll.u32 %s338_s9, 4  ;;  %s3622_s8 = scalar_lea.hbm %s3706_s6, %s2494_s19  ;;  %s3624_s14 = int_to_ptr.vmem [resolvable:$true] %s2145_s14 }
 0x1d8   : > { %s3629_s15 = scalar_lea.hbm %s3707_s7, %s2494_s19  ;;  %s3633_s21 = scalar_lea.sflag [#allocation6], %s2112_s23 }
 0x1d9   : > { %v2060_v52 = vadd.f32 %v2059_v0, %v3564_v30  ;;  %v2097_v53 = vadd.f32 %v2096_v50, %v2082_v51  ;;  %s2898_s18 = scalar_lea.vmem %s3624_s14, 16  ;;  %s2997_s20 = smov [#allocation5]  }
 0x1da   : > { %p2899_p1 = scmp.ne.s32.totalorder %s3624_s14, %s2898_s18  ;;  %s2902_s29 = sshll.u32 %s2997_s20, 4  ;;  %s2903_s29 = int_to_ptr.vmem [resolvable:$false] %s2902_s29 }
 0x1db   : > { %v2061_v55 = vadd.f32 %v2060_v52, %v1964_v58  ;;  %v2098_v1 = vadd.f32 %v2097_v53, %v2083_v16  ;;  %s2904_s17 = scalar_lea.vmem %s2903_s29, 32  ;;  %p2905_p4 = scmp.lt.s32.totalorder %s3624_s14, %s2903_s29 }
 0x1dc   : > { %p2900_p2 = pnand %p2899_p1, %p3079_p5  ;;  %p2906_p7 = scmp.lt.s32.totalorder %s2904_s17, %s2898_s18 }
 0x1dd   : > { %v2062_v57 = vrot.slane %v2061_v55, 4  ;;  %v2099_v59 = vadd.f32 %v2098_v1, %v2084_v54 }
 0x1de   : > { %p2901_p3 = pneg %p2900_p2  ;;  %p2907_p8 = por %p2906_p7, %p2905_p4 }
 0x1df   : > { %v2100_v60 = vrot.slane %v2099_v59, 4  ;;  %v2063_v61 = vadd.f32 %v2062_v57, %v2061_v55 }
 0x1e0   : > { %p2908_p9 = pnand %p2907_p8, %p2901_p3 }
 0x1e1   : > { %v2064_v62 = vrot.slane %v2063_v61, 2  ;;  %v2101_v63 = vadd.f32 %v2100_v60, %v2099_v59 }
 0x1e3   : > { %v2065_v10 = vadd.f32 %v2064_v62, %v2063_v61  ;;  %v2102_v2 = vrot.slane %v2101_v63, 2 }
 0x1e5   : > { %v2066_v3 = vrot.slane %v2065_v10, 1  ;;  %v2103_v4 = vadd.f32 %v2102_v2, %v2101_v63 }
 0x1e7   : > { %v2067_v5 = vadd.f32 %v2066_v3, %v2065_v10  ;;  %v2104_v6 = vrot.slane %v2103_v4, 1 }
 0x1e9   : > { %2068 = vst [vmem:[%s338_s9] sm:$0x1] %v2067_v5  ;;  %v2105_v42 = vadd.f32 %v2104_v6, %v2103_v4 }
 0x1ea   : > { %2911 = shalt.err (!%p2908_p9)
}
 0x1eb   : > { %s2912_s23 = scalar_lea.hbm %s3622_s8, 16  ;;  %s2916_s28 = scalar_lea.hbm %s3706_s6, 32 }
 0x1ec   : > { %p2913_p10 = scmp.ne.s32.totalorder %s3622_s8, %s2912_s23  ;;  %p2917_p13 = scmp.lt.u32.totalorder %s3622_s8, %s3706_s6 }
 0x1ed   : > { %p2918_p0 = scmp.lt.u32.totalorder %s2916_s28, %s2912_s23  ;;  %p2920_p2 = scmp.lt.u32.totalorder %s2912_s23, %s3622_s8 }
 0x1ee   : > { %p2914_p11 = pnand %p2913_p10, %p3079_p5 }
 0x1ef   : > { %p2919_p1 = por %p2918_p0, %p2917_p13 }
 0x1f0   : > { %p2915_p12 = pneg %p2914_p11 }
 0x1f1   : > { %p2921_p3 = por %p2920_p2, %p2919_p1 }
 0x1f3   : > { %p2922_p4 = pnand %p2921_p3, %p2915_p12 }
 0x1f5   : > { %2925 = shalt.err (!%p2922_p4)
}
 0x1f6   : > { %2736 = dma.vmem_to_hbm [thread:$0]  (%p3079_p5), %s3624_s14, 16, %s3622_s8, %s3633_s21  }
 0x1f7   : > { %s3712_s17 = scalar_lea.vmem [#allocation7], %s3541_s16  ;;  %s2926_s18 = scalar_lea.vmem %s3631_s13, 16 }
 0x1f8   : > { %2106 = vst [vmem:[%s3712_s17] sm:$0x1] %v2105_v42  ;;  %p2927_p7 = scmp.ne.s32.totalorder %s3631_s13, %s2926_s18  ;;  %s2998_s20 = smov [#allocation7]  }
 0x1f9   : > { %s2930_s23 = sshll.u32 %s2998_s20, 4  ;;  %s2931_s23 = int_to_ptr.vmem [resolvable:$false] %s2930_s23 }
 0x1fa   : > { %p2928_p8 = pnand %p2927_p7, %p3079_p5  ;;  %s2932_s19 = scalar_lea.vmem %s2931_s23, 32 }
 0x1fb   : > { %p2933_p10 = scmp.lt.s32.totalorder %s3631_s13, %s2931_s23  ;;  %p2934_p11 = scmp.lt.s32.totalorder %s2932_s19, %s2926_s18 }
 0x1fc   : > { %p2929_p9 = pneg %p2928_p8 }
 0x1fd   : > { %p2935_p12 = por %p2934_p11, %p2933_p10 }
 0x1ff   : > { %p2936_p13 = pnand %p2935_p12, %p2929_p9 }
 0x201   : > { %2939 = shalt.err (!%p2936_p13)
}
 0x202   : > { %s2940_s16 = scalar_lea.hbm %s3629_s15, 16  ;;  %s2944_s9 = scalar_lea.hbm %s3707_s7, 32 }
 0x203   : > { %p2941_p0 = scmp.ne.s32.totalorder %s3629_s15, %s2940_s16  ;;  %p2945_p3 = scmp.lt.u32.totalorder %s3629_s15, %s3707_s7 }
 0x204   : > { %p2946_p4 = scmp.lt.u32.totalorder %s2944_s9, %s2940_s16  ;;  %p2948_p8 = scmp.lt.u32.totalorder %s2940_s16, %s3629_s15 }
 0x205   : > { %p2942_p1 = pnand %p2941_p0, %p3079_p5 }
 0x206   : > { %p2947_p7 = por %p2946_p4, %p2945_p3 }
 0x207   : > { %p2943_p2 = pneg %p2942_p1 }
 0x208   : > { %p2949_p9 = por %p2948_p8, %p2947_p7 }
 0x20a   : > { %p2950_p10 = pnand %p2949_p9, %p2943_p2 }
 0x20c   : > { %2953 = shalt.err (!%p2950_p10)
}
 0x20d   : > { %2737 = dma.vmem_to_hbm [thread:$0]  (%p3079_p5), %s3631_s13, 16, %s3629_s15, %s3633_s21  }
 0x20e PF: > { %p2751_p11 = scmp.ge.s32.totalorder %s2992_s27, 2  ;;  %s2170_s29 = sand.u32 1, %s2980_s24  }
 0x20f   : > { %s2171_s17 = scalar_lea.sflag [#allocation4], %s2170_s29 }
 0x210   : > { %p2742_p12 = pnand %p2751_p11, %p3083_p6 }
 0x212   : > { %2971 = dma.done.wait (!%p2742_p12), %s2171_s17, 1024  }
 0x213   : > { %2973 = vsyncadd (!%p2742_p12), %s2171_s17, 4294966272  ;;  %s3713_s18 = sadd.s32 4294967294, %s2992_s27  }
 0x214   : > { %s2179_s20 = sand.u32 1, %s3713_s18  }
 0x215   : > { %s2180_s23 = scalar_lea.sflag [#allocation6], %s2179_s20 }
 0x216   : > { %2975 = dma.done.wait (!%p2742_p12), %s2180_s23, 32  }
 0x217   : > { %2977 = vsyncadd (!%p2742_p12), %s2180_s23, 4294967264  ;;  %p21_p5 = scmp.ge.s32.totalorder %s3064_s30, 4   ;;  %s3714_s24 = smov %s2984_s25 }
 0x218   : > { %s3715_s25 = smov %s2988_s26  ;;  %s3716_s26 = smov %s3077_s10 }
 0x219   : > { %s3717_s27 = smov %s3064_s30  ;;  %23 = sbr.rel (!%p21_p5) target bundleno = 5 (0x5), region = 118 }
 0x220   :  { %2192 = vsyncpa [#allocation4], 1 }
 0x221   :  { %2194 = vsyncpa [#allocation4 + $0x1], 1 }
 0x222   :  { %2195 = vsyncpa [#allocation6], 1 }
 0x223   :  { %2197 = vsyncpa [#allocation6 + $0x1], 1 }

</bundles_post_ra>
